<compile_context>
chip_gen: v7x
topology: tpu7x:2x2x1
jax: 0.10.0
libtpu: 0.0.40
codegen_flags: <defaults>
</compile_context>

<pallas_src>
import jax
import jax.numpy as jnp
from jax import lax
from jax.experimental import pallas as pl
from jax.experimental.pallas import tpu as pltpu


# ----------------------------- Pallas kernel -------------------------------

def make_attention_kernel(L, E, H, Bb):
    """Kernel processing one block of Bb examples."""
    G = 4 * H
    f32 = jnp.float32

    def kernel(x_ref, wih_ref, w_ref, b_ref, out_ref, gxl_scr, gxr_scr, out_scr):
        # ---- packed biases / vectors (one small blob) ----------------------
        b_lr = b_ref[0:1, :]            # (1, 2G)  [left gate bias | right gate bias]
        b1 = b_ref[1:2, 0:G]            # (1, G)   linear_1 bias (zero beyond H)
        u = b_ref[2:3, 0:G]             # (1, G)   attention vector (zero beyond H)
        b2 = b_ref[3:4, 0:G]            # (1, G)   linear_2 bias (zero beyond label)

        # ---- merged input-side gate pre-activations (single MXU pass) ------
        x2d = x_ref[...].reshape(2 * L * Bb, E)
        r = jnp.dot(x2d, wih_ref[...], preferred_element_type=f32) + b_lr
        r = r.reshape(2 * L, Bb, 2 * G)
        gxl_scr[...] = r[:L, :, :G]          # left pass uses columns [0, G)
        gxr_scr[...] = r[L:, :, G:]          # right pass uses columns [G, 2G)

        # ---- gate-activation constants (hoisted out of the loops) ----------
        # Packed gate order is [f | i | o | g]; g weights/bias were pre-scaled
        # by 2 on the host so a single sigmoid gives tanh there via the exact
        # identity tanh(x) = 2*sigmoid(2x) - 1.
        lane = lax.broadcasted_iota(jnp.int32, (Bb, G), 1)
        is_g = lane >= 3 * H
        g_scale = jnp.where(is_g, 2.0, 1.0).astype(f32)
        g_shift = jnp.where(is_g, -1.0, 0.0).astype(f32)

        def cell(gates, c):
            act = g_scale * jax.nn.sigmoid(gates) + g_shift
            # Bring i/o/g onto lanes [0, H).  The 2H roll (o) is direction
            # agnostic; the H and 3H rolls fetch {i, g} in hardware-dependent
            # order, but only their product (symmetric) is used.  Lanes >= H of
            # h/c carry bounded junk that only meets zero-padded weight rows.
            r1 = pltpu.roll(act, H, 1)
            r2 = pltpu.roll(act, 2 * H, 1)
            r3 = pltpu.roll(act, 3 * H, 1)
            c_new = act * c + r1 * r3        # f*c + i*g     on lanes [0, H)
            h_new = r2 * jnp.tanh(c_new)     # o*tanh(c_new) on lanes [0, H)
            return h_new, c_new

        h = jnp.zeros((Bb, G), f32)          # real state lives in lanes [0, H)
        c = jnp.zeros((Bb, G), f32)

        # ---- left LSTMCell pass (fully unrolled; L is small, no spills) ----
        # TODO(synk): if a bundle dump shows Mosaic re-streaming whh each step,
        # switch to explicit pltpu.matmul_push_rhs / matmul_acc_lhs / matmul_pop.
        whh_l = w_ref[0:G, :]                # (G, G); rows >= H are zero
        for t in range(L):
            gates = gxl_scr[t] + jnp.dot(h, whh_l, preferred_element_type=f32)
            h, c = cell(gates, c)
            out_scr[t] = h

        # ---- right LSTMCell pass (h/c carry over, as in the PyTorch code); --
        # ---- the left*right elementwise product is fused into the store. ----
        whh_r = w_ref[G:2 * G, :]            # (G, G); rows >= H are zero
        for t in range(L):
            gates = gxr_scr[t] + jnp.dot(h, whh_r, preferred_element_type=f32)
            h, c = cell(gates, c)
            out_scr[t] = out_scr[t] * h      # output_l[t] * output_r[t]

        # ---- attention + classifier ----------------------------------------
        output = out_scr[...]                                   # (L, Bb, G)
        out2d = output.reshape(L * Bb, G)
        t_ = jnp.tanh(jnp.dot(out2d, w_ref[2 * G:3 * G, :],
                              preferred_element_type=f32) + b1)  # lanes >= H are 0
        beta = jnp.sum(t_ * u, axis=-1, keepdims=True).reshape(L, Bb, 1)
        beta = beta - jnp.max(beta, axis=0, keepdims=True)
        e = jnp.exp(beta)
        inv = pl.reciprocal(jnp.sum(e, axis=0, keepdims=True), approx=True)
        alfa = e * inv                                           # softmax over L steps
        s = jnp.sum(alfa * output, axis=0)                       # (Bb, G)
        out_ref[...] = jnp.dot(s, w_ref[3 * G:4 * G, :],
                               preferred_element_type=f32) + b2

    return kernel


def attention_forward(x_all, wih_blob, w_blob, b_blob, *, L, E, H, B, Bb, label):
    G = 4 * H
    assert B % Bb == 0
    out = pl.pallas_call(
        make_attention_kernel(L, E, H, Bb),
        out_shape=jax.ShapeDtypeStruct((B, G), jnp.float32),     # lane-dense output
        grid_spec=pltpu.PrefetchScalarGridSpec(
            num_scalar_prefetch=0,
            grid=(B // Bb,),
            in_specs=[
                pl.BlockSpec((2 * L, Bb, E), lambda i: (0, i, 0)),   # per-block inputs
                pl.BlockSpec((E, 2 * G), lambda i: (0, 0)),          # merged wih blob
                pl.BlockSpec((4 * G, G), lambda i: (0, 0)),          # whh_l|whh_r|w1|w2
                pl.BlockSpec((8, 2 * G), lambda i: (0, 0)),          # bias blob
            ],
            out_specs=pl.BlockSpec((Bb, G), lambda i: (i, 0)),
            scratch_shapes=[
                pltpu.VMEM((L, Bb, G), jnp.float32),   # gxl: left input-side pre-acts
                pltpu.VMEM((L, Bb, G), jnp.float32),   # gxr: right input-side pre-acts
                pltpu.VMEM((L, Bb, G), jnp.float32),   # out: left h, then left*right prod
            ],
        ),
        compiler_params=pltpu.CompilerParams(
            dimension_semantics=("parallel",)),        # shard batch blocks across TCs (v7x)
    )(x_all, wih_blob, w_blob, b_blob)
    return out[:, :label]


# ----------------------------- pure-JAX reference --------------------------

def reference_forward(inputs_l, inputs_r, wih_l, whh_l, b_l, wih_r, whh_r, b_r,
                      w1, b1, u, w2, b2, H):
    """Single-example reference mirroring the PyTorch forward (full precision)."""
    L = inputs_l.shape[0]
    dot = lambda a, b: jnp.dot(a, b, precision=lax.Precision.HIGHEST)

    def cell(x_row, h, c, wih, whh, b):
        g = dot(x_row, wih.T) + dot(h, whh.T) + b
        i = jax.nn.sigmoid(g[:, :H])
        f = jax.nn.sigmoid(g[:, H:2 * H])
        gg = jnp.tanh(g[:, 2 * H:3 * H])
        o = jax.nn.sigmoid(g[:, 3 * H:])
        c = f * c + i * gg
        h = o * jnp.tanh(c)
        return h, c

    h = jnp.zeros((1, H), jnp.float32)
    c = jnp.zeros((1, H), jnp.float32)
    outl = []
    for t in range(L):
        h, c = cell(inputs_l[t:t + 1], h, c, wih_l, whh_l, b_l)
        outl.append(h)
    outr = []
    for t in range(L):
        h, c = cell(inputs_r[t:t + 1], h, c, wih_r, whh_r, b_r)
        outr.append(h)
    output = jnp.concatenate(outl, 0) * jnp.concatenate(outr, 0)
    tt = jnp.tanh(dot(output, w1.T) + b1)
    beta = dot(u, tt.T)
    alfa = jax.nn.softmax(beta, axis=-1)
    s = dot(alfa, output)
    return dot(s, w2.T) + b2


# ----------------------------- main -----------------------------------------

if __name__ == "__main__":
    # args: embed_num=50, embed_dim=32, hidden_size=32, label_num=4, max_norm=5.0
    embed_num, E, H, label_num, L = 50, 32, 32, 4, 8
    B, Bb = 16, 8                     # batch of examples; Bb examples per grid block
    max_norm = 5.0
    G = 4 * H

    key = jax.random.PRNGKey(0)
    ks = jax.random.split(key, 16)

    # Parameters (deterministic synthetic init, PyTorch-style layouts).
    w_emb = jax.random.normal(ks[0], (embed_num, E), jnp.float32)
    lim = 1.0 / float(H) ** 0.5
    def unif(k, shape):
        return jax.random.uniform(k, shape, jnp.float32, -lim, lim)
    wih_l = unif(ks[1], (4 * H, E)); whh_l = unif(ks[2], (4 * H, H))
    bih_l = unif(ks[3], (4 * H,));   bhh_l = unif(ks[4], (4 * H,))
    wih_r = unif(ks[5], (4 * H, E)); whh_r = unif(ks[6], (4 * H, H))
    bih_r = unif(ks[7], (4 * H,));   bhh_r = unif(ks[8], (4 * H,))
    w1 = unif(ks[9], (H, H));        b1 = unif(ks[10], (H,))
    u = jax.random.normal(ks[11], (1, H), jnp.float32)
    w2 = unif(ks[12], (label_num, H)); b2 = unif(ks[13], (label_num,))

    # Example inputs: token ids (B, L) and per-example target spans.
    tokens = jax.random.randint(ks[14], (B, L), 0, embed_num)
    spans = [(b % 4, min(L - 1, (b % 4) + 1 + (b % 3))) for b in range(B)]

    # Glue: embedding lookup with max_norm renormalization (as nn.Embedding).
    # TODO(synk): PyTorch's max_norm renorm is an in-place side effect; here it is a pure op.
    emb_all = w_emb[tokens]                                        # (B, L, E)
    norms = jnp.linalg.norm(emb_all, axis=-1, keepdims=True)
    emb_all = emb_all * jnp.minimum(1.0, max_norm / (norms + 1e-7))

    # Build per-step LSTM inputs per example, replicating the PyTorch control
    # flow: only the FIRST out-of-span index (in traversal order) uses its own
    # embedding; every other step feeds the span-averaged `target`.
    def build_inputs(emb, target, start, end, order):
        rows, ist = [], True
        for idx in order:
            if (idx < start or idx > end) and ist:
                rows.append(emb[idx])
                ist = False
            else:
                rows.append(target)
        return jnp.stack(rows, axis=0)

    x_list, ref_inputs = [], []
    for b in range(B):
        start, end = spans[b]
        emb = emb_all[b]
        target = jnp.mean(emb[start:end + 1], axis=0)              # (E,)
        inputs_l = build_inputs(emb, target, start, end, range(L))
        inputs_r = build_inputs(emb, target, start, end, range(L - 1, -1, -1))
        x_list.append(jnp.concatenate([inputs_l, inputs_r], axis=0))   # (2L, E)
        ref_inputs.append((inputs_l, inputs_r))

    # Activation blob: step-major, batch in sublanes -> (2L, B, E).
    x_all = jnp.stack(x_list, axis=1).astype(jnp.float32)

    # ---- pack kernel parameter blobs ---------------------------------------
    def pack_gates(w):
        # PyTorch gate order along axis 0 is [i, f, g, o]; repack to
        # [f, i, o, g] and pre-scale the g block by 2 (2*sigmoid(2x)-1 == tanh(x)).
        i, f, g, o = w[:H], w[H:2 * H], w[2 * H:3 * H], w[3 * H:4 * H]
        return jnp.concatenate([f, i, o, 2.0 * g], axis=0)

    def pad2(a, rows, cols):
        z = jnp.zeros((rows, cols), jnp.float32)
        return z.at[: a.shape[0], : a.shape[1]].set(a)

    wih_l_p = pack_gates(wih_l).T            # (E, G)
    wih_r_p = pack_gates(wih_r).T            # (E, G)
    whh_l_p = pack_gates(whh_l).T            # (H, G)
    whh_r_p = pack_gates(whh_r).T            # (H, G)
    b_l_p = pack_gates(bih_l + bhh_l).reshape(1, G)
    b_r_p = pack_gates(bih_r + bhh_r).reshape(1, G)

    # Merged input-weight blob (E, 2G): left columns [0,G), right columns [G,2G).
    wih_blob = jnp.concatenate([wih_l_p, wih_r_p], axis=1).astype(jnp.float32)

    # Recurrent/head blob (4G, G): rows >= H of each block are zero so the junk
    # lanes [H, 4H) of the padded hidden state never contaminate any result.
    w_blob = jnp.concatenate(
        [pad2(whh_l_p, G, G), pad2(whh_r_p, G, G),
         pad2(w1.T, G, G), pad2(w2.T, G, G)], axis=0).astype(jnp.float32)

    # Bias blob (8, 2G): [b_l|b_r], b1, u, b2 (all zero padded), rest zeros.
    b_blob = jnp.concatenate(
        [jnp.concatenate([b_l_p, b_r_p], axis=1),
         pad2(b1.reshape(1, H), 1, 2 * G),
         pad2(u, 1, 2 * G),
         pad2(b2.reshape(1, label_num), 1, 2 * G),
         jnp.zeros((4, 2 * G), jnp.float32)], axis=0).astype(jnp.float32)

    # ---- run the kernel -----------------------------------------------------
    out = attention_forward(x_all, wih_blob, w_blob, b_blob,
                            L=L, E=E, H=H, B=B, Bb=Bb, label=label_num)
    out = jax.block_until_ready(out)

    # ---- correctness check vs. per-example pure-JAX reference --------------
    b_l_ref = (bih_l + bhh_l).reshape(1, 4 * H)
    b_r_ref = (bih_r + bhh_r).reshape(1, 4 * H)

    @jax.jit
    def ref_one(inputs_l, inputs_r):
        return reference_forward(inputs_l, inputs_r, wih_l, whh_l, b_l_ref,
                                 wih_r, whh_r, b_r_ref, w1, b1.reshape(1, H), u,
                                 w2, b2.reshape(1, label_num), H)

    ref_all = jnp.concatenate([ref_one(il, ir) for (il, ir) in ref_inputs], axis=0)

    assert out.shape == (B, label_num)
    assert jnp.allclose(out, ref_all, rtol=2e-3, atol=2e-3), (out, ref_all)

    print("KERNEL_OK")
</pallas_src>

<mosaic_0001>
module attributes {stable_mosaic.version = 11 : i64} {
  func.func @kernel(%arg0: i32, %arg1: memref<16x8x32xf32, #tpu.memory_space<vmem>>, %arg2: memref<32x256xf32, #tpu.memory_space<vmem>>, %arg3: memref<512x128xf32, #tpu.memory_space<vmem>>, %arg4: memref<8x256xf32, #tpu.memory_space<vmem>>, %arg5: memref<8x128xf32, #tpu.memory_space<vmem>>, %arg6: memref<8x8x128xf32, #tpu.memory_space<vmem>>, %arg7: memref<8x8x128xf32, #tpu.memory_space<vmem>>, %arg8: memref<8x8x128xf32, #tpu.memory_space<vmem>>) attributes {dimension_semantics = [#tpu.dimension_semantics<parallel>], iteration_bounds = array<i64: 2>, scalar_prefetch = 0 : i64, scratch_operands = 3 : i64, tpu.core_type = #tpu.core_type<tc>, window_params = [{transform_indices = @transform_0, window_bounds = array<i64: 16, 8, 32>}, {pipeline_mode = #tpu.pipeline_mode<synchronous>, transform_indices = @transform_1, window_bounds = array<i64: 32, 256>}, {pipeline_mode = #tpu.pipeline_mode<synchronous>, transform_indices = @transform_2, window_bounds = array<i64: 512, 128>}, {pipeline_mode = #tpu.pipeline_mode<synchronous>, transform_indices = @transform_3, window_bounds = array<i64: 8, 256>}, {transform_indices = @transform_4, window_bounds = array<i64: 8, 128>}]} {
    %c0 = arith.constant 0 : index
    %c0_0 = arith.constant 0 : index
    %0 = vector.load %arg4[%c0, %c0_0] : memref<8x256xf32, #tpu.memory_space<vmem>>, vector<1x256xf32>
    %c1 = arith.constant 1 : index
    %c0_1 = arith.constant 0 : index
    %1 = vector.load %arg4[%c1, %c0_1] : memref<8x256xf32, #tpu.memory_space<vmem>>, vector<1x128xf32>
    %c2 = arith.constant 2 : index
    %c0_2 = arith.constant 0 : index
    %2 = vector.load %arg4[%c2, %c0_2] : memref<8x256xf32, #tpu.memory_space<vmem>>, vector<1x128xf32>
    %c3 = arith.constant 3 : index
    %c0_3 = arith.constant 0 : index
    %3 = vector.load %arg4[%c3, %c0_3] : memref<8x256xf32, #tpu.memory_space<vmem>>, vector<1x128xf32>
    %c0_4 = arith.constant 0 : index
    %c0_5 = arith.constant 0 : index
    %c0_6 = arith.constant 0 : index
    %4 = vector.load %arg1[%c0_4, %c0_5, %c0_6] : memref<16x8x32xf32, #tpu.memory_space<vmem>>, vector<16x8x32xf32>
    %5 = vector.shape_cast %4 : vector<16x8x32xf32> to vector<128x32xf32>
    %c0_7 = arith.constant 0 : index
    %c0_8 = arith.constant 0 : index
    %6 = vector.load %arg2[%c0_7, %c0_8] : memref<32x256xf32, #tpu.memory_space<vmem>>, vector<32x256xf32>
    %cst = arith.constant dense<0.000000e+00> : vector<128x256xf32>
    %7 = tpu.matmul %5, %6, %cst {dimension_numbers = #tpu.dot_dimension_numbers<[1], [0], [0], [1], [0, 0, 1, 1], [], []>} : vector<128x32xf32>, vector<32x256xf32>, vector<128x256xf32> -> vector<128x256xf32>
    %8 = vector.broadcast %0 : vector<1x256xf32> to vector<128x256xf32>
    %9 = arith.addf %7, %8 : vector<128x256xf32>
    %10 = vector.shape_cast %9 : vector<128x256xf32> to vector<16x8x256xf32>
    %11 = vector.extract_strided_slice %10 {offsets = [0, 0, 0], sizes = [8, 8, 128], strides = [1, 1, 1]} : vector<16x8x256xf32> to vector<8x8x128xf32>
    %c0_9 = arith.constant 0 : index
    %c0_10 = arith.constant 0 : index
    %c0_11 = arith.constant 0 : index
    %12 = vector.load %arg6[%c0_9, %c0_10, %c0_11] : memref<8x8x128xf32, #tpu.memory_space<vmem>>, vector<8x8x128xf32>
    tpu.vector_store %arg6[%c0_9, %c0_10, %c0_11], %11 {strides = array<i32>} : memref<8x8x128xf32, #tpu.memory_space<vmem>>, vector<8x8x128xf32>,
    %13 = vector.extract_strided_slice %10 {offsets = [8, 0, 128], sizes = [8, 8, 128], strides = [1, 1, 1]} : vector<16x8x256xf32> to vector<8x8x128xf32>
    %c0_12 = arith.constant 0 : index
    %c0_13 = arith.constant 0 : index
    %c0_14 = arith.constant 0 : index
    %14 = vector.load %arg7[%c0_12, %c0_13, %c0_14] : memref<8x8x128xf32, #tpu.memory_space<vmem>>, vector<8x8x128xf32>
    tpu.vector_store %arg7[%c0_12, %c0_13, %c0_14], %13 {strides = array<i32>} : memref<8x8x128xf32, #tpu.memory_space<vmem>>, vector<8x8x128xf32>,
    %15 = tpu.iota {dimensions = array<i32: 1>} : vector<8x128xi32>
    %c96_i32 = arith.constant 96 : i32
    %16 = vector.broadcast %c96_i32 : i32 to vector<8x128xi32>
    %17 = arith.cmpi sge, %15, %16 : vector<8x128xi32>
    %cst_15 = arith.constant 2.000000e+00 : f32
    %cst_16 = arith.constant 1.000000e+00 : f32
    %18 = vector.broadcast %cst_15 : f32 to vector<8x128xf32>
    %19 = vector.broadcast %cst_16 : f32 to vector<8x128xf32>
    %20 = arith.select %17, %18, %19 : vector<8x128xi1>, vector<8x128xf32>
    %cst_17 = arith.constant -1.000000e+00 : f32
    %cst_18 = arith.constant 0.000000e+00 : f32
    %21 = vector.broadcast %cst_17 : f32 to vector<8x128xf32>
    %22 = vector.broadcast %cst_18 : f32 to vector<8x128xf32>
    %23 = arith.select %17, %21, %22 : vector<8x128xi1>, vector<8x128xf32>
    %cst_19 = arith.constant 0.000000e+00 : f32
    %24 = vector.broadcast %cst_19 : f32 to vector<8x128xf32>
    %cst_20 = arith.constant 0.000000e+00 : f32
    %25 = vector.broadcast %cst_20 : f32 to vector<8x128xf32>
    %c0_21 = arith.constant 0 : index
    %c0_22 = arith.constant 0 : index
    %26 = vector.load %arg3[%c0_21, %c0_22] : memref<512x128xf32, #tpu.memory_space<vmem>>, vector<128x128xf32>
    %c0_23 = arith.constant 0 : index
    %c0_24 = arith.constant 0 : index
    %c0_25 = arith.constant 0 : index
    %27 = vector.load %arg6[%c0_23, %c0_24, %c0_25] : memref<8x8x128xf32, #tpu.memory_space<vmem>>, vector<1x8x128xf32>
    %28 = vector.shape_cast %27 : vector<1x8x128xf32> to vector<8x128xf32>
    %cst_26 = arith.constant dense<0.000000e+00> : vector<8x128xf32>
    %29 = tpu.matmul %24, %26, %cst_26 {dimension_numbers = #tpu.dot_dimension_numbers<[1], [0], [0], [1], [0, 0, 1, 1], [], []>} : vector<8x128xf32>, vector<128x128xf32>, vector<8x128xf32> -> vector<8x128xf32>
    %30 = arith.addf %28, %29 : vector<8x128xf32>
    %31 = arith.negf %30 : vector<8x128xf32>
    %32 = math.exp %31 : vector<8x128xf32>
    %cst_27 = arith.constant 1.000000e+00 : f32
    %33 = vector.broadcast %cst_27 : f32 to vector<8x128xf32>
    %34 = arith.addf %33, %32 : vector<8x128xf32>
    %35 = arith.divf %33, %34 : vector<8x128xf32>
    %36 = arith.mulf %20, %35 : vector<8x128xf32>
    %37 = arith.addf %36, %23 : vector<8x128xf32>
    %c32_i32 = arith.constant 32 : i32
    %38 = tpu.dynamic_rotate %37 by %c32_i32 dim 1 : vector<8x128xf32>, i32 -> vector<8x128xf32>
    %c64_i32 = arith.constant 64 : i32
    %39 = tpu.dynamic_rotate %37 by %c64_i32 dim 1 : vector<8x128xf32>, i32 -> vector<8x128xf32>
    %c96_i32_28 = arith.constant 96 : i32
    %40 = tpu.dynamic_rotate %37 by %c96_i32_28 dim 1 : vector<8x128xf32>, i32 -> vector<8x128xf32>
    %41 = arith.mulf %37, %25 : vector<8x128xf32>
    %42 = arith.mulf %38, %40 : vector<8x128xf32>
    %43 = arith.addf %41, %42 : vector<8x128xf32>
    %44 = math.tanh %43 : vector<8x128xf32>
    %45 = arith.mulf %39, %44 : vector<8x128xf32>
    %c0_29 = arith.constant 0 : index
    %c0_30 = arith.constant 0 : index
    %c0_31 = arith.constant 0 : index
    %46 = vector.load %arg8[%c0_29, %c0_30, %c0_31] : memref<8x8x128xf32, #tpu.memory_space<vmem>>, vector<1x8x128xf32>
    %47 = vector.shape_cast %46 : vector<1x8x128xf32> to vector<8x128xf32>
    %48 = vector.shape_cast %45 : vector<8x128xf32> to vector<1x8x128xf32>
    tpu.vector_store %arg8[%c0_29, %c0_30, %c0_31], %48 {strides = array<i32>} : memref<8x8x128xf32, #tpu.memory_space<vmem>>, vector<1x8x128xf32>,
    %c1_32 = arith.constant 1 : index
    %c0_33 = arith.constant 0 : index
    %c0_34 = arith.constant 0 : index
    %49 = vector.load %arg6[%c1_32, %c0_33, %c0_34] : memref<8x8x128xf32, #tpu.memory_space<vmem>>, vector<1x8x128xf32>
    %50 = vector.shape_cast %49 : vector<1x8x128xf32> to vector<8x128xf32>
    %cst_35 = arith.constant dense<0.000000e+00> : vector<8x128xf32>
    %51 = tpu.matmul %45, %26, %cst_35 {dimension_numbers = #tpu.dot_dimension_numbers<[1], [0], [0], [1], [0, 0, 1, 1], [], []>} : vector<8x128xf32>, vector<128x128xf32>, vector<8x128xf32> -> vector<8x128xf32>
    %52 = arith.addf %50, %51 : vector<8x128xf32>
    %53 = arith.negf %52 : vector<8x128xf32>
    %54 = math.exp %53 : vector<8x128xf32>
    %cst_36 = arith.constant 1.000000e+00 : f32
    %55 = vector.broadcast %cst_36 : f32 to vector<8x128xf32>
    %56 = arith.addf %55, %54 : vector<8x128xf32>
    %57 = arith.divf %55, %56 : vector<8x128xf32>
    %58 = arith.mulf %20, %57 : vector<8x128xf32>
    %59 = arith.addf %58, %23 : vector<8x128xf32>
    %c32_i32_37 = arith.constant 32 : i32
    %60 = tpu.dynamic_rotate %59 by %c32_i32_37 dim 1 : vector<8x128xf32>, i32 -> vector<8x128xf32>
    %c64_i32_38 = arith.constant 64 : i32
    %61 = tpu.dynamic_rotate %59 by %c64_i32_38 dim 1 : vector<8x128xf32>, i32 -> vector<8x128xf32>
    %c96_i32_39 = arith.constant 96 : i32
    %62 = tpu.dynamic_rotate %59 by %c96_i32_39 dim 1 : vector<8x128xf32>, i32 -> vector<8x128xf32>
    %63 = arith.mulf %59, %43 : vector<8x128xf32>
    %64 = arith.mulf %60, %62 : vector<8x128xf32>
    %65 = arith.addf %63, %64 : vector<8x128xf32>
    %66 = math.tanh %65 : vector<8x128xf32>
    %67 = arith.mulf %61, %66 : vector<8x128xf32>
    %c1_40 = arith.constant 1 : index
    %c0_41 = arith.constant 0 : index
    %c0_42 = arith.constant 0 : index
    %68 = vector.load %arg8[%c1_40, %c0_41, %c0_42] : memref<8x8x128xf32, #tpu.memory_space<vmem>>, vector<1x8x128xf32>
    %69 = vector.shape_cast %68 : vector<1x8x128xf32> to vector<8x128xf32>
    %70 = vector.shape_cast %67 : vector<8x128xf32> to vector<1x8x128xf32>
    tpu.vector_store %arg8[%c1_40, %c0_41, %c0_42], %70 {strides = array<i32>} : memref<8x8x128xf32, #tpu.memory_space<vmem>>, vector<1x8x128xf32>,
    %c2_43 = arith.constant 2 : index
    %c0_44 = arith.constant 0 : index
    %c0_45 = arith.constant 0 : index
    %71 = vector.load %arg6[%c2_43, %c0_44, %c0_45] : memref<8x8x128xf32, #tpu.memory_space<vmem>>, vector<1x8x128xf32>
    %72 = vector.shape_cast %71 : vector<1x8x128xf32> to vector<8x128xf32>
    %cst_46 = arith.constant dense<0.000000e+00> : vector<8x128xf32>
    %73 = tpu.matmul %67, %26, %cst_46 {dimension_numbers = #tpu.dot_dimension_numbers<[1], [0], [0], [1], [0, 0, 1, 1], [], []>} : vector<8x128xf32>, vector<128x128xf32>, vector<8x128xf32> -> vector<8x128xf32>
    %74 = arith.addf %72, %73 : vector<8x128xf32>
    %75 = arith.negf %74 : vector<8x128xf32>
    %76 = math.exp %75 : vector<8x128xf32>
    %cst_47 = arith.constant 1.000000e+00 : f32
    %77 = vector.broadcast %cst_47 : f32 to vector<8x128xf32>
    %78 = arith.addf %77, %76 : vector<8x128xf32>
    %79 = arith.divf %77, %78 : vector<8x128xf32>
    %80 = arith.mulf %20, %79 : vector<8x128xf32>
    %81 = arith.addf %80, %23 : vector<8x128xf32>
    %c32_i32_48 = arith.constant 32 : i32
    %82 = tpu.dynamic_rotate %81 by %c32_i32_48 dim 1 : vector<8x128xf32>, i32 -> vector<8x128xf32>
    %c64_i32_49 = arith.constant 64 : i32
    %83 = tpu.dynamic_rotate %81 by %c64_i32_49 dim 1 : vector<8x128xf32>, i32 -> vector<8x128xf32>
    %c96_i32_50 = arith.constant 96 : i32
    %84 = tpu.dynamic_rotate %81 by %c96_i32_50 dim 1 : vector<8x128xf32>, i32 -> vector<8x128xf32>
    %85 = arith.mulf %81, %65 : vector<8x128xf32>
    %86 = arith.mulf %82, %84 : vector<8x128xf32>
    %87 = arith.addf %85, %86 : vector<8x128xf32>
    %88 = math.tanh %87 : vector<8x128xf32>
    %89 = arith.mulf %83, %88 : vector<8x128xf32>
    %c2_51 = arith.constant 2 : index
    %c0_52 = arith.constant 0 : index
    %c0_53 = arith.constant 0 : index
    %90 = vector.load %arg8[%c2_51, %c0_52, %c0_53] : memref<8x8x128xf32, #tpu.memory_space<vmem>>, vector<1x8x128xf32>
    %91 = vector.shape_cast %90 : vector<1x8x128xf32> to vector<8x128xf32>
    %92 = vector.shape_cast %89 : vector<8x128xf32> to vector<1x8x128xf32>
    tpu.vector_store %arg8[%c2_51, %c0_52, %c0_53], %92 {strides = array<i32>} : memref<8x8x128xf32, #tpu.memory_space<vmem>>, vector<1x8x128xf32>,
    %c3_54 = arith.constant 3 : index
    %c0_55 = arith.constant 0 : index
    %c0_56 = arith.constant 0 : index
    %93 = vector.load %arg6[%c3_54, %c0_55, %c0_56] : memref<8x8x128xf32, #tpu.memory_space<vmem>>, vector<1x8x128xf32>
    %94 = vector.shape_cast %93 : vector<1x8x128xf32> to vector<8x128xf32>
    %cst_57 = arith.constant dense<0.000000e+00> : vector<8x128xf32>
    %95 = tpu.matmul %89, %26, %cst_57 {dimension_numbers = #tpu.dot_dimension_numbers<[1], [0], [0], [1], [0, 0, 1, 1], [], []>} : vector<8x128xf32>, vector<128x128xf32>, vector<8x128xf32> -> vector<8x128xf32>
    %96 = arith.addf %94, %95 : vector<8x128xf32>
    %97 = arith.negf %96 : vector<8x128xf32>
    %98 = math.exp %97 : vector<8x128xf32>
    %cst_58 = arith.constant 1.000000e+00 : f32
    %99 = vector.broadcast %cst_58 : f32 to vector<8x128xf32>
    %100 = arith.addf %99, %98 : vector<8x128xf32>
    %101 = arith.divf %99, %100 : vector<8x128xf32>
    %102 = arith.mulf %20, %101 : vector<8x128xf32>
    %103 = arith.addf %102, %23 : vector<8x128xf32>
    %c32_i32_59 = arith.constant 32 : i32
    %104 = tpu.dynamic_rotate %103 by %c32_i32_59 dim 1 : vector<8x128xf32>, i32 -> vector<8x128xf32>
    %c64_i32_60 = arith.constant 64 : i32
    %105 = tpu.dynamic_rotate %103 by %c64_i32_60 dim 1 : vector<8x128xf32>, i32 -> vector<8x128xf32>
    %c96_i32_61 = arith.constant 96 : i32
    %106 = tpu.dynamic_rotate %103 by %c96_i32_61 dim 1 : vector<8x128xf32>, i32 -> vector<8x128xf32>
    %107 = arith.mulf %103, %87 : vector<8x128xf32>
    %108 = arith.mulf %104, %106 : vector<8x128xf32>
    %109 = arith.addf %107, %108 : vector<8x128xf32>
    %110 = math.tanh %109 : vector<8x128xf32>
    %111 = arith.mulf %105, %110 : vector<8x128xf32>
    %c3_62 = arith.constant 3 : index
    %c0_63 = arith.constant 0 : index
    %c0_64 = arith.constant 0 : index
    %112 = vector.load %arg8[%c3_62, %c0_63, %c0_64] : memref<8x8x128xf32, #tpu.memory_space<vmem>>, vector<1x8x128xf32>
    %113 = vector.shape_cast %112 : vector<1x8x128xf32> to vector<8x128xf32>
    %114 = vector.shape_cast %111 : vector<8x128xf32> to vector<1x8x128xf32>
    tpu.vector_store %arg8[%c3_62, %c0_63, %c0_64], %114 {strides = array<i32>} : memref<8x8x128xf32, #tpu.memory_space<vmem>>, vector<1x8x128xf32>,
    %c4 = arith.constant 4 : index
    %c0_65 = arith.constant 0 : index
    %c0_66 = arith.constant 0 : index
    %115 = vector.load %arg6[%c4, %c0_65, %c0_66] : memref<8x8x128xf32, #tpu.memory_space<vmem>>, vector<1x8x128xf32>
    %116 = vector.shape_cast %115 : vector<1x8x128xf32> to vector<8x128xf32>
    %cst_67 = arith.constant dense<0.000000e+00> : vector<8x128xf32>
    %117 = tpu.matmul %111, %26, %cst_67 {dimension_numbers = #tpu.dot_dimension_numbers<[1], [0], [0], [1], [0, 0, 1, 1], [], []>} : vector<8x128xf32>, vector<128x128xf32>, vector<8x128xf32> -> vector<8x128xf32>
    %118 = arith.addf %116, %117 : vector<8x128xf32>
    %119 = arith.negf %118 : vector<8x128xf32>
    %120 = math.exp %119 : vector<8x128xf32>
    %cst_68 = arith.constant 1.000000e+00 : f32
    %121 = vector.broadcast %cst_68 : f32 to vector<8x128xf32>
    %122 = arith.addf %121, %120 : vector<8x128xf32>
    %123 = arith.divf %121, %122 : vector<8x128xf32>
    %124 = arith.mulf %20, %123 : vector<8x128xf32>
    %125 = arith.addf %124, %23 : vector<8x128xf32>
    %c32_i32_69 = arith.constant 32 : i32
    %126 = tpu.dynamic_rotate %125 by %c32_i32_69 dim 1 : vector<8x128xf32>, i32 -> vector<8x128xf32>
    %c64_i32_70 = arith.constant 64 : i32
    %127 = tpu.dynamic_rotate %125 by %c64_i32_70 dim 1 : vector<8x128xf32>, i32 -> vector<8x128xf32>
    %c96_i32_71 = arith.constant 96 : i32
    %128 = tpu.dynamic_rotate %125 by %c96_i32_71 dim 1 : vector<8x128xf32>, i32 -> vector<8x128xf32>
    %129 = arith.mulf %125, %109 : vector<8x128xf32>
    %130 = arith.mulf %126, %128 : vector<8x128xf32>
    %131 = arith.addf %129, %130 : vector<8x128xf32>
    %132 = math.tanh %131 : vector<8x128xf32>
    %133 = arith.mulf %127, %132 : vector<8x128xf32>
    %c4_72 = arith.constant 4 : index
    %c0_73 = arith.constant 0 : index
    %c0_74 = arith.constant 0 : index
    %134 = vector.load %arg8[%c4_72, %c0_73, %c0_74] : memref<8x8x128xf32, #tpu.memory_space<vmem>>, vector<1x8x128xf32>
    %135 = vector.shape_cast %134 : vector<1x8x128xf32> to vector<8x128xf32>
    %136 = vector.shape_cast %133 : vector<8x128xf32> to vector<1x8x128xf32>
    tpu.vector_store %arg8[%c4_72, %c0_73, %c0_74], %136 {strides = array<i32>} : memref<8x8x128xf32, #tpu.memory_space<vmem>>, vector<1x8x128xf32>,
    %c5 = arith.constant 5 : index
    %c0_75 = arith.constant 0 : index
    %c0_76 = arith.constant 0 : index
    %137 = vector.load %arg6[%c5, %c0_75, %c0_76] : memref<8x8x128xf32, #tpu.memory_space<vmem>>, vector<1x8x128xf32>
    %138 = vector.shape_cast %137 : vector<1x8x128xf32> to vector<8x128xf32>
    %cst_77 = arith.constant dense<0.000000e+00> : vector<8x128xf32>
    %139 = tpu.matmul %133, %26, %cst_77 {dimension_numbers = #tpu.dot_dimension_numbers<[1], [0], [0], [1], [0, 0, 1, 1], [], []>} : vector<8x128xf32>, vector<128x128xf32>, vector<8x128xf32> -> vector<8x128xf32>
    %140 = arith.addf %138, %139 : vector<8x128xf32>
    %141 = arith.negf %140 : vector<8x128xf32>
    %142 = math.exp %141 : vector<8x128xf32>
    %cst_78 = arith.constant 1.000000e+00 : f32
    %143 = vector.broadcast %cst_78 : f32 to vector<8x128xf32>
    %144 = arith.addf %143, %142 : vector<8x128xf32>
    %145 = arith.divf %143, %144 : vector<8x128xf32>
    %146 = arith.mulf %20, %145 : vector<8x128xf32>
    %147 = arith.addf %146, %23 : vector<8x128xf32>
    %c32_i32_79 = arith.constant 32 : i32
    %148 = tpu.dynamic_rotate %147 by %c32_i32_79 dim 1 : vector<8x128xf32>, i32 -> vector<8x128xf32>
    %c64_i32_80 = arith.constant 64 : i32
    %149 = tpu.dynamic_rotate %147 by %c64_i32_80 dim 1 : vector<8x128xf32>, i32 -> vector<8x128xf32>
    %c96_i32_81 = arith.constant 96 : i32
    %150 = tpu.dynamic_rotate %147 by %c96_i32_81 dim 1 : vector<8x128xf32>, i32 -> vector<8x128xf32>
    %151 = arith.mulf %147, %131 : vector<8x128xf32>
    %152 = arith.mulf %148, %150 : vector<8x128xf32>
    %153 = arith.addf %151, %152 : vector<8x128xf32>
    %154 = math.tanh %153 : vector<8x128xf32>
    %155 = arith.mulf %149, %154 : vector<8x128xf32>
    %c5_82 = arith.constant 5 : index
    %c0_83 = arith.constant 0 : index
    %c0_84 = arith.constant 0 : index
    %156 = vector.load %arg8[%c5_82, %c0_83, %c0_84] : memref<8x8x128xf32, #tpu.memory_space<vmem>>, vector<1x8x128xf32>
    %157 = vector.shape_cast %156 : vector<1x8x128xf32> to vector<8x128xf32>
    %158 = vector.shape_cast %155 : vector<8x128xf32> to vector<1x8x128xf32>
    tpu.vector_store %arg8[%c5_82, %c0_83, %c0_84], %158 {strides = array<i32>} : memref<8x8x128xf32, #tpu.memory_space<vmem>>, vector<1x8x128xf32>,
    %c6 = arith.constant 6 : index
    %c0_85 = arith.constant 0 : index
    %c0_86 = arith.constant 0 : index
    %159 = vector.load %arg6[%c6, %c0_85, %c0_86] : memref<8x8x128xf32, #tpu.memory_space<vmem>>, vector<1x8x128xf32>
    %160 = vector.shape_cast %159 : vector<1x8x128xf32> to vector<8x128xf32>
    %cst_87 = arith.constant dense<0.000000e+00> : vector<8x128xf32>
    %161 = tpu.matmul %155, %26, %cst_87 {dimension_numbers = #tpu.dot_dimension_numbers<[1], [0], [0], [1], [0, 0, 1, 1], [], []>} : vector<8x128xf32>, vector<128x128xf32>, vector<8x128xf32> -> vector<8x128xf32>
    %162 = arith.addf %160, %161 : vector<8x128xf32>
    %163 = arith.negf %162 : vector<8x128xf32>
    %164 = math.exp %163 : vector<8x128xf32>
    %cst_88 = arith.constant 1.000000e+00 : f32
    %165 = vector.broadcast %cst_88 : f32 to vector<8x128xf32>
    %166 = arith.addf %165, %164 : vector<8x128xf32>
    %167 = arith.divf %165, %166 : vector<8x128xf32>
    %168 = arith.mulf %20, %167 : vector<8x128xf32>
    %169 = arith.addf %168, %23 : vector<8x128xf32>
    %c32_i32_89 = arith.constant 32 : i32
    %170 = tpu.dynamic_rotate %169 by %c32_i32_89 dim 1 : vector<8x128xf32>, i32 -> vector<8x128xf32>
    %c64_i32_90 = arith.constant 64 : i32
    %171 = tpu.dynamic_rotate %169 by %c64_i32_90 dim 1 : vector<8x128xf32>, i32 -> vector<8x128xf32>
    %c96_i32_91 = arith.constant 96 : i32
    %172 = tpu.dynamic_rotate %169 by %c96_i32_91 dim 1 : vector<8x128xf32>, i32 -> vector<8x128xf32>
    %173 = arith.mulf %169, %153 : vector<8x128xf32>
    %174 = arith.mulf %170, %172 : vector<8x128xf32>
    %175 = arith.addf %173, %174 : vector<8x128xf32>
    %176 = math.tanh %175 : vector<8x128xf32>
    %177 = arith.mulf %171, %176 : vector<8x128xf32>
    %c6_92 = arith.constant 6 : index
    %c0_93 = arith.constant 0 : index
    %c0_94 = arith.constant 0 : index
    %178 = vector.load %arg8[%c6_92, %c0_93, %c0_94] : memref<8x8x128xf32, #tpu.memory_space<vmem>>, vector<1x8x128xf32>
    %179 = vector.shape_cast %178 : vector<1x8x128xf32> to vector<8x128xf32>
    %180 = vector.shape_cast %177 : vector<8x128xf32> to vector<1x8x128xf32>
    tpu.vector_store %arg8[%c6_92, %c0_93, %c0_94], %180 {strides = array<i32>} : memref<8x8x128xf32, #tpu.memory_space<vmem>>, vector<1x8x128xf32>,
    %c7 = arith.constant 7 : index
    %c0_95 = arith.constant 0 : index
    %c0_96 = arith.constant 0 : index
    %181 = vector.load %arg6[%c7, %c0_95, %c0_96] : memref<8x8x128xf32, #tpu.memory_space<vmem>>, vector<1x8x128xf32>
    %182 = vector.shape_cast %181 : vector<1x8x128xf32> to vector<8x128xf32>
    %cst_97 = arith.constant dense<0.000000e+00> : vector<8x128xf32>
    %183 = tpu.matmul %177, %26, %cst_97 {dimension_numbers = #tpu.dot_dimension_numbers<[1], [0], [0], [1], [0, 0, 1, 1], [], []>} : vector<8x128xf32>, vector<128x128xf32>, vector<8x128xf32> -> vector<8x128xf32>
    %184 = arith.addf %182, %183 : vector<8x128xf32>
    %185 = arith.negf %184 : vector<8x128xf32>
    %186 = math.exp %185 : vector<8x128xf32>
    %cst_98 = arith.constant 1.000000e+00 : f32
    %187 = vector.broadcast %cst_98 : f32 to vector<8x128xf32>
    %188 = arith.addf %187, %186 : vector<8x128xf32>
    %189 = arith.divf %187, %188 : vector<8x128xf32>
    %190 = arith.mulf %20, %189 : vector<8x128xf32>
    %191 = arith.addf %190, %23 : vector<8x128xf32>
    %c32_i32_99 = arith.constant 32 : i32
    %192 = tpu.dynamic_rotate %191 by %c32_i32_99 dim 1 : vector<8x128xf32>, i32 -> vector<8x128xf32>
    %c64_i32_100 = arith.constant 64 : i32
    %193 = tpu.dynamic_rotate %191 by %c64_i32_100 dim 1 : vector<8x128xf32>, i32 -> vector<8x128xf32>
    %c96_i32_101 = arith.constant 96 : i32
    %194 = tpu.dynamic_rotate %191 by %c96_i32_101 dim 1 : vector<8x128xf32>, i32 -> vector<8x128xf32>
    %195 = arith.mulf %191, %175 : vector<8x128xf32>
    %196 = arith.mulf %192, %194 : vector<8x128xf32>
    %197 = arith.addf %195, %196 : vector<8x128xf32>
    %198 = math.tanh %197 : vector<8x128xf32>
    %199 = arith.mulf %193, %198 : vector<8x128xf32>
    %c7_102 = arith.constant 7 : index
    %c0_103 = arith.constant 0 : index
    %c0_104 = arith.constant 0 : index
    %200 = vector.load %arg8[%c7_102, %c0_103, %c0_104] : memref<8x8x128xf32, #tpu.memory_space<vmem>>, vector<1x8x128xf32>
    %201 = vector.shape_cast %200 : vector<1x8x128xf32> to vector<8x128xf32>
    %202 = vector.shape_cast %199 : vector<8x128xf32> to vector<1x8x128xf32>
    tpu.vector_store %arg8[%c7_102, %c0_103, %c0_104], %202 {strides = array<i32>} : memref<8x8x128xf32, #tpu.memory_space<vmem>>, vector<1x8x128xf32>,
    %c128 = arith.constant 128 : index
    %c0_105 = arith.constant 0 : index
    %203 = vector.load %arg3[%c128, %c0_105] : memref<512x128xf32, #tpu.memory_space<vmem>>, vector<128x128xf32>
    %c0_106 = arith.constant 0 : index
    %c0_107 = arith.constant 0 : index
    %c0_108 = arith.constant 0 : index
    %204 = vector.load %arg7[%c0_106, %c0_107, %c0_108] : memref<8x8x128xf32, #tpu.memory_space<vmem>>, vector<1x8x128xf32>
    %205 = vector.shape_cast %204 : vector<1x8x128xf32> to vector<8x128xf32>
    %cst_109 = arith.constant dense<0.000000e+00> : vector<8x128xf32>
    %206 = tpu.matmul %199, %203, %cst_109 {dimension_numbers = #tpu.dot_dimension_numbers<[1], [0], [0], [1], [0, 0, 1, 1], [], []>} : vector<8x128xf32>, vector<128x128xf32>, vector<8x128xf32> -> vector<8x128xf32>
    %207 = arith.addf %205, %206 : vector<8x128xf32>
    %208 = arith.negf %207 : vector<8x128xf32>
    %209 = math.exp %208 : vector<8x128xf32>
    %cst_110 = arith.constant 1.000000e+00 : f32
    %210 = vector.broadcast %cst_110 : f32 to vector<8x128xf32>
    %211 = arith.addf %210, %209 : vector<8x128xf32>
    %212 = arith.divf %210, %211 : vector<8x128xf32>
    %213 = arith.mulf %20, %212 : vector<8x128xf32>
    %214 = arith.addf %213, %23 : vector<8x128xf32>
    %c32_i32_111 = arith.constant 32 : i32
    %215 = tpu.dynamic_rotate %214 by %c32_i32_111 dim 1 : vector<8x128xf32>, i32 -> vector<8x128xf32>
    %c64_i32_112 = arith.constant 64 : i32
    %216 = tpu.dynamic_rotate %214 by %c64_i32_112 dim 1 : vector<8x128xf32>, i32 -> vector<8x128xf32>
    %c96_i32_113 = arith.constant 96 : i32
    %217 = tpu.dynamic_rotate %214 by %c96_i32_113 dim 1 : vector<8x128xf32>, i32 -> vector<8x128xf32>
    %218 = arith.mulf %214, %197 : vector<8x128xf32>
    %219 = arith.mulf %215, %217 : vector<8x128xf32>
    %220 = arith.addf %218, %219 : vector<8x128xf32>
    %221 = math.tanh %220 : vector<8x128xf32>
    %222 = arith.mulf %216, %221 : vector<8x128xf32>
    %c0_114 = arith.constant 0 : index
    %c0_115 = arith.constant 0 : index
    %c0_116 = arith.constant 0 : index
    %223 = vector.load %arg8[%c0_114, %c0_115, %c0_116] : memref<8x8x128xf32, #tpu.memory_space<vmem>>, vector<1x8x128xf32>
    %224 = vector.shape_cast %223 : vector<1x8x128xf32> to vector<8x128xf32>
    %225 = arith.mulf %224, %222 : vector<8x128xf32>
    %c0_117 = arith.constant 0 : index
    %c0_118 = arith.constant 0 : index
    %c0_119 = arith.constant 0 : index
    %226 = vector.load %arg8[%c0_117, %c0_118, %c0_119] : memref<8x8x128xf32, #tpu.memory_space<vmem>>, vector<1x8x128xf32>
    %227 = vector.shape_cast %226 : vector<1x8x128xf32> to vector<8x128xf32>
    %228 = vector.shape_cast %225 : vector<8x128xf32> to vector<1x8x128xf32>
    tpu.vector_store %arg8[%c0_117, %c0_118, %c0_119], %228 {strides = array<i32>} : memref<8x8x128xf32, #tpu.memory_space<vmem>>, vector<1x8x128xf32>,
    %c1_120 = arith.constant 1 : index
    %c0_121 = arith.constant 0 : index
    %c0_122 = arith.constant 0 : index
    %229 = vector.load %arg7[%c1_120, %c0_121, %c0_122] : memref<8x8x128xf32, #tpu.memory_space<vmem>>, vector<1x8x128xf32>
    %230 = vector.shape_cast %229 : vector<1x8x128xf32> to vector<8x128xf32>
    %cst_123 = arith.constant dense<0.000000e+00> : vector<8x128xf32>
    %231 = tpu.matmul %222, %203, %cst_123 {dimension_numbers = #tpu.dot_dimension_numbers<[1], [0], [0], [1], [0, 0, 1, 1], [], []>} : vector<8x128xf32>, vector<128x128xf32>, vector<8x128xf32> -> vector<8x128xf32>
    %232 = arith.addf %230, %231 : vector<8x128xf32>
    %233 = arith.negf %232 : vector<8x128xf32>
    %234 = math.exp %233 : vector<8x128xf32>
    %cst_124 = arith.constant 1.000000e+00 : f32
    %235 = vector.broadcast %cst_124 : f32 to vector<8x128xf32>
    %236 = arith.addf %235, %234 : vector<8x128xf32>
    %237 = arith.divf %235, %236 : vector<8x128xf32>
    %238 = arith.mulf %20, %237 : vector<8x128xf32>
    %239 = arith.addf %238, %23 : vector<8x128xf32>
    %c32_i32_125 = arith.constant 32 : i32
    %240 = tpu.dynamic_rotate %239 by %c32_i32_125 dim 1 : vector<8x128xf32>, i32 -> vector<8x128xf32>
    %c64_i32_126 = arith.constant 64 : i32
    %241 = tpu.dynamic_rotate %239 by %c64_i32_126 dim 1 : vector<8x128xf32>, i32 -> vector<8x128xf32>
    %c96_i32_127 = arith.constant 96 : i32
    %242 = tpu.dynamic_rotate %239 by %c96_i32_127 dim 1 : vector<8x128xf32>, i32 -> vector<8x128xf32>
    %243 = arith.mulf %239, %220 : vector<8x128xf32>
    %244 = arith.mulf %240, %242 : vector<8x128xf32>
    %245 = arith.addf %243, %244 : vector<8x128xf32>
    %246 = math.tanh %245 : vector<8x128xf32>
    %247 = arith.mulf %241, %246 : vector<8x128xf32>
    %c1_128 = arith.constant 1 : index
    %c0_129 = arith.constant 0 : index
    %c0_130 = arith.constant 0 : index
    %248 = vector.load %arg8[%c1_128, %c0_129, %c0_130] : memref<8x8x128xf32, #tpu.memory_space<vmem>>, vector<1x8x128xf32>
    %249 = vector.shape_cast %248 : vector<1x8x128xf32> to vector<8x128xf32>
    %250 = arith.mulf %249, %247 : vector<8x128xf32>
    %c1_131 = arith.constant 1 : index
    %c0_132 = arith.constant 0 : index
    %c0_133 = arith.constant 0 : index
    %251 = vector.load %arg8[%c1_131, %c0_132, %c0_133] : memref<8x8x128xf32, #tpu.memory_space<vmem>>, vector<1x8x128xf32>
    %252 = vector.shape_cast %251 : vector<1x8x128xf32> to vector<8x128xf32>
    %253 = vector.shape_cast %250 : vector<8x128xf32> to vector<1x8x128xf32>
    tpu.vector_store %arg8[%c1_131, %c0_132, %c0_133], %253 {strides = array<i32>} : memref<8x8x128xf32, #tpu.memory_space<vmem>>, vector<1x8x128xf32>,
    %c2_134 = arith.constant 2 : index
    %c0_135 = arith.constant 0 : index
    %c0_136 = arith.constant 0 : index
    %254 = vector.load %arg7[%c2_134, %c0_135, %c0_136] : memref<8x8x128xf32, #tpu.memory_space<vmem>>, vector<1x8x128xf32>
    %255 = vector.shape_cast %254 : vector<1x8x128xf32> to vector<8x128xf32>
    %cst_137 = arith.constant dense<0.000000e+00> : vector<8x128xf32>
    %256 = tpu.matmul %247, %203, %cst_137 {dimension_numbers = #tpu.dot_dimension_numbers<[1], [0], [0], [1], [0, 0, 1, 1], [], []>} : vector<8x128xf32>, vector<128x128xf32>, vector<8x128xf32> -> vector<8x128xf32>
    %257 = arith.addf %255, %256 : vector<8x128xf32>
    %258 = arith.negf %257 : vector<8x128xf32>
    %259 = math.exp %258 : vector<8x128xf32>
    %cst_138 = arith.constant 1.000000e+00 : f32
    %260 = vector.broadcast %cst_138 : f32 to vector<8x128xf32>
    %261 = arith.addf %260, %259 : vector<8x128xf32>
    %262 = arith.divf %260, %261 : vector<8x128xf32>
    %263 = arith.mulf %20, %262 : vector<8x128xf32>
    %264 = arith.addf %263, %23 : vector<8x128xf32>
    %c32_i32_139 = arith.constant 32 : i32
    %265 = tpu.dynamic_rotate %264 by %c32_i32_139 dim 1 : vector<8x128xf32>, i32 -> vector<8x128xf32>
    %c64_i32_140 = arith.constant 64 : i32
    %266 = tpu.dynamic_rotate %264 by %c64_i32_140 dim 1 : vector<8x128xf32>, i32 -> vector<8x128xf32>
    %c96_i32_141 = arith.constant 96 : i32
    %267 = tpu.dynamic_rotate %264 by %c96_i32_141 dim 1 : vector<8x128xf32>, i32 -> vector<8x128xf32>
    %268 = arith.mulf %264, %245 : vector<8x128xf32>
    %269 = arith.mulf %265, %267 : vector<8x128xf32>
    %270 = arith.addf %268, %269 : vector<8x128xf32>
    %271 = math.tanh %270 : vector<8x128xf32>
    %272 = arith.mulf %266, %271 : vector<8x128xf32>
    %c2_142 = arith.constant 2 : index
    %c0_143 = arith.constant 0 : index
    %c0_144 = arith.constant 0 : index
    %273 = vector.load %arg8[%c2_142, %c0_143, %c0_144] : memref<8x8x128xf32, #tpu.memory_space<vmem>>, vector<1x8x128xf32>
    %274 = vector.shape_cast %273 : vector<1x8x128xf32> to vector<8x128xf32>
    %275 = arith.mulf %274, %272 : vector<8x128xf32>
    %c2_145 = arith.constant 2 : index
    %c0_146 = arith.constant 0 : index
    %c0_147 = arith.constant 0 : index
    %276 = vector.load %arg8[%c2_145, %c0_146, %c0_147] : memref<8x8x128xf32, #tpu.memory_space<vmem>>, vector<1x8x128xf32>
    %277 = vector.shape_cast %276 : vector<1x8x128xf32> to vector<8x128xf32>
    %278 = vector.shape_cast %275 : vector<8x128xf32> to vector<1x8x128xf32>
    tpu.vector_store %arg8[%c2_145, %c0_146, %c0_147], %278 {strides = array<i32>} : memref<8x8x128xf32, #tpu.memory_space<vmem>>, vector<1x8x128xf32>,
    %c3_148 = arith.constant 3 : index
    %c0_149 = arith.constant 0 : index
    %c0_150 = arith.constant 0 : index
    %279 = vector.load %arg7[%c3_148, %c0_149, %c0_150] : memref<8x8x128xf32, #tpu.memory_space<vmem>>, vector<1x8x128xf32>
    %280 = vector.shape_cast %279 : vector<1x8x128xf32> to vector<8x128xf32>
    %cst_151 = arith.constant dense<0.000000e+00> : vector<8x128xf32>
    %281 = tpu.matmul %272, %203, %cst_151 {dimension_numbers = #tpu.dot_dimension_numbers<[1], [0], [0], [1], [0, 0, 1, 1], [], []>} : vector<8x128xf32>, vector<128x128xf32>, vector<8x128xf32> -> vector<8x128xf32>
    %282 = arith.addf %280, %281 : vector<8x128xf32>
    %283 = arith.negf %282 : vector<8x128xf32>
    %284 = math.exp %283 : vector<8x128xf32>
    %cst_152 = arith.constant 1.000000e+00 : f32
    %285 = vector.broadcast %cst_152 : f32 to vector<8x128xf32>
    %286 = arith.addf %285, %284 : vector<8x128xf32>
    %287 = arith.divf %285, %286 : vector<8x128xf32>
    %288 = arith.mulf %20, %287 : vector<8x128xf32>
    %289 = arith.addf %288, %23 : vector<8x128xf32>
    %c32_i32_153 = arith.constant 32 : i32
    %290 = tpu.dynamic_rotate %289 by %c32_i32_153 dim 1 : vector<8x128xf32>, i32 -> vector<8x128xf32>
    %c64_i32_154 = arith.constant 64 : i32
    %291 = tpu.dynamic_rotate %289 by %c64_i32_154 dim 1 : vector<8x128xf32>, i32 -> vector<8x128xf32>
    %c96_i32_155 = arith.constant 96 : i32
    %292 = tpu.dynamic_rotate %289 by %c96_i32_155 dim 1 : vector<8x128xf32>, i32 -> vector<8x128xf32>
    %293 = arith.mulf %289, %270 : vector<8x128xf32>
    %294 = arith.mulf %290, %292 : vector<8x128xf32>
    %295 = arith.addf %293, %294 : vector<8x128xf32>
    %296 = math.tanh %295 : vector<8x128xf32>
    %297 = arith.mulf %291, %296 : vector<8x128xf32>
    %c3_156 = arith.constant 3 : index
    %c0_157 = arith.constant 0 : index
    %c0_158 = arith.constant 0 : index
    %298 = vector.load %arg8[%c3_156, %c0_157, %c0_158] : memref<8x8x128xf32, #tpu.memory_space<vmem>>, vector<1x8x128xf32>
    %299 = vector.shape_cast %298 : vector<1x8x128xf32> to vector<8x128xf32>
    %300 = arith.mulf %299, %297 : vector<8x128xf32>
    %c3_159 = arith.constant 3 : index
    %c0_160 = arith.constant 0 : index
    %c0_161 = arith.constant 0 : index
    %301 = vector.load %arg8[%c3_159, %c0_160, %c0_161] : memref<8x8x128xf32, #tpu.memory_space<vmem>>, vector<1x8x128xf32>
    %302 = vector.shape_cast %301 : vector<1x8x128xf32> to vector<8x128xf32>
    %303 = vector.shape_cast %300 : vector<8x128xf32> to vector<1x8x128xf32>
    tpu.vector_store %arg8[%c3_159, %c0_160, %c0_161], %303 {strides = array<i32>} : memref<8x8x128xf32, #tpu.memory_space<vmem>>, vector<1x8x128xf32>,
    %c4_162 = arith.constant 4 : index
    %c0_163 = arith.constant 0 : index
    %c0_164 = arith.constant 0 : index
    %304 = vector.load %arg7[%c4_162, %c0_163, %c0_164] : memref<8x8x128xf32, #tpu.memory_space<vmem>>, vector<1x8x128xf32>
    %305 = vector.shape_cast %304 : vector<1x8x128xf32> to vector<8x128xf32>
    %cst_165 = arith.constant dense<0.000000e+00> : vector<8x128xf32>
    %306 = tpu.matmul %297, %203, %cst_165 {dimension_numbers = #tpu.dot_dimension_numbers<[1], [0], [0], [1], [0, 0, 1, 1], [], []>} : vector<8x128xf32>, vector<128x128xf32>, vector<8x128xf32> -> vector<8x128xf32>
    %307 = arith.addf %305, %306 : vector<8x128xf32>
    %308 = arith.negf %307 : vector<8x128xf32>
    %309 = math.exp %308 : vector<8x128xf32>
    %cst_166 = arith.constant 1.000000e+00 : f32
    %310 = vector.broadcast %cst_166 : f32 to vector<8x128xf32>
    %311 = arith.addf %310, %309 : vector<8x128xf32>
    %312 = arith.divf %310, %311 : vector<8x128xf32>
    %313 = arith.mulf %20, %312 : vector<8x128xf32>
    %314 = arith.addf %313, %23 : vector<8x128xf32>
    %c32_i32_167 = arith.constant 32 : i32
    %315 = tpu.dynamic_rotate %314 by %c32_i32_167 dim 1 : vector<8x128xf32>, i32 -> vector<8x128xf32>
    %c64_i32_168 = arith.constant 64 : i32
    %316 = tpu.dynamic_rotate %314 by %c64_i32_168 dim 1 : vector<8x128xf32>, i32 -> vector<8x128xf32>
    %c96_i32_169 = arith.constant 96 : i32
    %317 = tpu.dynamic_rotate %314 by %c96_i32_169 dim 1 : vector<8x128xf32>, i32 -> vector<8x128xf32>
    %318 = arith.mulf %314, %295 : vector<8x128xf32>
    %319 = arith.mulf %315, %317 : vector<8x128xf32>
    %320 = arith.addf %318, %319 : vector<8x128xf32>
    %321 = math.tanh %320 : vector<8x128xf32>
    %322 = arith.mulf %316, %321 : vector<8x128xf32>
    %c4_170 = arith.constant 4 : index
    %c0_171 = arith.constant 0 : index
    %c0_172 = arith.constant 0 : index
    %323 = vector.load %arg8[%c4_170, %c0_171, %c0_172] : memref<8x8x128xf32, #tpu.memory_space<vmem>>, vector<1x8x128xf32>
    %324 = vector.shape_cast %323 : vector<1x8x128xf32> to vector<8x128xf32>
    %325 = arith.mulf %324, %322 : vector<8x128xf32>
    %c4_173 = arith.constant 4 : index
    %c0_174 = arith.constant 0 : index
    %c0_175 = arith.constant 0 : index
    %326 = vector.load %arg8[%c4_173, %c0_174, %c0_175] : memref<8x8x128xf32, #tpu.memory_space<vmem>>, vector<1x8x128xf32>
    %327 = vector.shape_cast %326 : vector<1x8x128xf32> to vector<8x128xf32>
    %328 = vector.shape_cast %325 : vector<8x128xf32> to vector<1x8x128xf32>
    tpu.vector_store %arg8[%c4_173, %c0_174, %c0_175], %328 {strides = array<i32>} : memref<8x8x128xf32, #tpu.memory_space<vmem>>, vector<1x8x128xf32>,
    %c5_176 = arith.constant 5 : index
    %c0_177 = arith.constant 0 : index
    %c0_178 = arith.constant 0 : index
    %329 = vector.load %arg7[%c5_176, %c0_177, %c0_178] : memref<8x8x128xf32, #tpu.memory_space<vmem>>, vector<1x8x128xf32>
    %330 = vector.shape_cast %329 : vector<1x8x128xf32> to vector<8x128xf32>
    %cst_179 = arith.constant dense<0.000000e+00> : vector<8x128xf32>
    %331 = tpu.matmul %322, %203, %cst_179 {dimension_numbers = #tpu.dot_dimension_numbers<[1], [0], [0], [1], [0, 0, 1, 1], [], []>} : vector<8x128xf32>, vector<128x128xf32>, vector<8x128xf32> -> vector<8x128xf32>
    %332 = arith.addf %330, %331 : vector<8x128xf32>
    %333 = arith.negf %332 : vector<8x128xf32>
    %334 = math.exp %333 : vector<8x128xf32>
    %cst_180 = arith.constant 1.000000e+00 : f32
    %335 = vector.broadcast %cst_180 : f32 to vector<8x128xf32>
    %336 = arith.addf %335, %334 : vector<8x128xf32>
    %337 = arith.divf %335, %336 : vector<8x128xf32>
    %338 = arith.mulf %20, %337 : vector<8x128xf32>
    %339 = arith.addf %338, %23 : vector<8x128xf32>
    %c32_i32_181 = arith.constant 32 : i32
    %340 = tpu.dynamic_rotate %339 by %c32_i32_181 dim 1 : vector<8x128xf32>, i32 -> vector<8x128xf32>
    %c64_i32_182 = arith.constant 64 : i32
    %341 = tpu.dynamic_rotate %339 by %c64_i32_182 dim 1 : vector<8x128xf32>, i32 -> vector<8x128xf32>
    %c96_i32_183 = arith.constant 96 : i32
    %342 = tpu.dynamic_rotate %339 by %c96_i32_183 dim 1 : vector<8x128xf32>, i32 -> vector<8x128xf32>
    %343 = arith.mulf %339, %320 : vector<8x128xf32>
    %344 = arith.mulf %340, %342 : vector<8x128xf32>
    %345 = arith.addf %343, %344 : vector<8x128xf32>
    %346 = math.tanh %345 : vector<8x128xf32>
    %347 = arith.mulf %341, %346 : vector<8x128xf32>
    %c5_184 = arith.constant 5 : index
    %c0_185 = arith.constant 0 : index
    %c0_186 = arith.constant 0 : index
    %348 = vector.load %arg8[%c5_184, %c0_185, %c0_186] : memref<8x8x128xf32, #tpu.memory_space<vmem>>, vector<1x8x128xf32>
    %349 = vector.shape_cast %348 : vector<1x8x128xf32> to vector<8x128xf32>
    %350 = arith.mulf %349, %347 : vector<8x128xf32>
    %c5_187 = arith.constant 5 : index
    %c0_188 = arith.constant 0 : index
    %c0_189 = arith.constant 0 : index
    %351 = vector.load %arg8[%c5_187, %c0_188, %c0_189] : memref<8x8x128xf32, #tpu.memory_space<vmem>>, vector<1x8x128xf32>
    %352 = vector.shape_cast %351 : vector<1x8x128xf32> to vector<8x128xf32>
    %353 = vector.shape_cast %350 : vector<8x128xf32> to vector<1x8x128xf32>
    tpu.vector_store %arg8[%c5_187, %c0_188, %c0_189], %353 {strides = array<i32>} : memref<8x8x128xf32, #tpu.memory_space<vmem>>, vector<1x8x128xf32>,
    %c6_190 = arith.constant 6 : index
    %c0_191 = arith.constant 0 : index
    %c0_192 = arith.constant 0 : index
    %354 = vector.load %arg7[%c6_190, %c0_191, %c0_192] : memref<8x8x128xf32, #tpu.memory_space<vmem>>, vector<1x8x128xf32>
    %355 = vector.shape_cast %354 : vector<1x8x128xf32> to vector<8x128xf32>
    %cst_193 = arith.constant dense<0.000000e+00> : vector<8x128xf32>
    %356 = tpu.matmul %347, %203, %cst_193 {dimension_numbers = #tpu.dot_dimension_numbers<[1], [0], [0], [1], [0, 0, 1, 1], [], []>} : vector<8x128xf32>, vector<128x128xf32>, vector<8x128xf32> -> vector<8x128xf32>
    %357 = arith.addf %355, %356 : vector<8x128xf32>
    %358 = arith.negf %357 : vector<8x128xf32>
    %359 = math.exp %358 : vector<8x128xf32>
    %cst_194 = arith.constant 1.000000e+00 : f32
    %360 = vector.broadcast %cst_194 : f32 to vector<8x128xf32>
    %361 = arith.addf %360, %359 : vector<8x128xf32>
    %362 = arith.divf %360, %361 : vector<8x128xf32>
    %363 = arith.mulf %20, %362 : vector<8x128xf32>
    %364 = arith.addf %363, %23 : vector<8x128xf32>
    %c32_i32_195 = arith.constant 32 : i32
    %365 = tpu.dynamic_rotate %364 by %c32_i32_195 dim 1 : vector<8x128xf32>, i32 -> vector<8x128xf32>
    %c64_i32_196 = arith.constant 64 : i32
    %366 = tpu.dynamic_rotate %364 by %c64_i32_196 dim 1 : vector<8x128xf32>, i32 -> vector<8x128xf32>
    %c96_i32_197 = arith.constant 96 : i32
    %367 = tpu.dynamic_rotate %364 by %c96_i32_197 dim 1 : vector<8x128xf32>, i32 -> vector<8x128xf32>
    %368 = arith.mulf %364, %345 : vector<8x128xf32>
    %369 = arith.mulf %365, %367 : vector<8x128xf32>
    %370 = arith.addf %368, %369 : vector<8x128xf32>
    %371 = math.tanh %370 : vector<8x128xf32>
    %372 = arith.mulf %366, %371 : vector<8x128xf32>
    %c6_198 = arith.constant 6 : index
    %c0_199 = arith.constant 0 : index
    %c0_200 = arith.constant 0 : index
    %373 = vector.load %arg8[%c6_198, %c0_199, %c0_200] : memref<8x8x128xf32, #tpu.memory_space<vmem>>, vector<1x8x128xf32>
    %374 = vector.shape_cast %373 : vector<1x8x128xf32> to vector<8x128xf32>
    %375 = arith.mulf %374, %372 : vector<8x128xf32>
    %c6_201 = arith.constant 6 : index
    %c0_202 = arith.constant 0 : index
    %c0_203 = arith.constant 0 : index
    %376 = vector.load %arg8[%c6_201, %c0_202, %c0_203] : memref<8x8x128xf32, #tpu.memory_space<vmem>>, vector<1x8x128xf32>
    %377 = vector.shape_cast %376 : vector<1x8x128xf32> to vector<8x128xf32>
    %378 = vector.shape_cast %375 : vector<8x128xf32> to vector<1x8x128xf32>
    tpu.vector_store %arg8[%c6_201, %c0_202, %c0_203], %378 {strides = array<i32>} : memref<8x8x128xf32, #tpu.memory_space<vmem>>, vector<1x8x128xf32>,
    %c7_204 = arith.constant 7 : index
    %c0_205 = arith.constant 0 : index
    %c0_206 = arith.constant 0 : index
    %379 = vector.load %arg7[%c7_204, %c0_205, %c0_206] : memref<8x8x128xf32, #tpu.memory_space<vmem>>, vector<1x8x128xf32>
    %380 = vector.shape_cast %379 : vector<1x8x128xf32> to vector<8x128xf32>
    %cst_207 = arith.constant dense<0.000000e+00> : vector<8x128xf32>
    %381 = tpu.matmul %372, %203, %cst_207 {dimension_numbers = #tpu.dot_dimension_numbers<[1], [0], [0], [1], [0, 0, 1, 1], [], []>} : vector<8x128xf32>, vector<128x128xf32>, vector<8x128xf32> -> vector<8x128xf32>
    %382 = arith.addf %380, %381 : vector<8x128xf32>
    %383 = arith.negf %382 : vector<8x128xf32>
    %384 = math.exp %383 : vector<8x128xf32>
    %cst_208 = arith.constant 1.000000e+00 : f32
    %385 = vector.broadcast %cst_208 : f32 to vector<8x128xf32>
    %386 = arith.addf %385, %384 : vector<8x128xf32>
    %387 = arith.divf %385, %386 : vector<8x128xf32>
    %388 = arith.mulf %20, %387 : vector<8x128xf32>
    %389 = arith.addf %388, %23 : vector<8x128xf32>
    %c32_i32_209 = arith.constant 32 : i32
    %390 = tpu.dynamic_rotate %389 by %c32_i32_209 dim 1 : vector<8x128xf32>, i32 -> vector<8x128xf32>
    %c64_i32_210 = arith.constant 64 : i32
    %391 = tpu.dynamic_rotate %389 by %c64_i32_210 dim 1 : vector<8x128xf32>, i32 -> vector<8x128xf32>
    %c96_i32_211 = arith.constant 96 : i32
    %392 = tpu.dynamic_rotate %389 by %c96_i32_211 dim 1 : vector<8x128xf32>, i32 -> vector<8x128xf32>
    %393 = arith.mulf %389, %370 : vector<8x128xf32>
    %394 = arith.mulf %390, %392 : vector<8x128xf32>
    %395 = arith.addf %393, %394 : vector<8x128xf32>
    %396 = math.tanh %395 : vector<8x128xf32>
    %397 = arith.mulf %391, %396 : vector<8x128xf32>
    %c7_212 = arith.constant 7 : index
    %c0_213 = arith.constant 0 : index
    %c0_214 = arith.constant 0 : index
    %398 = vector.load %arg8[%c7_212, %c0_213, %c0_214] : memref<8x8x128xf32, #tpu.memory_space<vmem>>, vector<1x8x128xf32>
    %399 = vector.shape_cast %398 : vector<1x8x128xf32> to vector<8x128xf32>
    %400 = arith.mulf %399, %397 : vector<8x128xf32>
    %c7_215 = arith.constant 7 : index
    %c0_216 = arith.constant 0 : index
    %c0_217 = arith.constant 0 : index
    %401 = vector.load %arg8[%c7_215, %c0_216, %c0_217] : memref<8x8x128xf32, #tpu.memory_space<vmem>>, vector<1x8x128xf32>
    %402 = vector.shape_cast %401 : vector<1x8x128xf32> to vector<8x128xf32>
    %403 = vector.shape_cast %400 : vector<8x128xf32> to vector<1x8x128xf32>
    tpu.vector_store %arg8[%c7_215, %c0_216, %c0_217], %403 {strides = array<i32>} : memref<8x8x128xf32, #tpu.memory_space<vmem>>, vector<1x8x128xf32>,
    %c0_218 = arith.constant 0 : index
    %c0_219 = arith.constant 0 : index
    %c0_220 = arith.constant 0 : index
    %404 = vector.load %arg8[%c0_218, %c0_219, %c0_220] : memref<8x8x128xf32, #tpu.memory_space<vmem>>, vector<8x8x128xf32>
    %405 = vector.shape_cast %404 : vector<8x8x128xf32> to vector<64x128xf32>
    %c256 = arith.constant 256 : index
    %c0_221 = arith.constant 0 : index
    %406 = vector.load %arg3[%c256, %c0_221] : memref<512x128xf32, #tpu.memory_space<vmem>>, vector<128x128xf32>
    %cst_222 = arith.constant dense<0.000000e+00> : vector<64x128xf32>
    %407 = tpu.matmul %405, %406, %cst_222 {dimension_numbers = #tpu.dot_dimension_numbers<[1], [0], [0], [1], [0, 0, 1, 1], [], []>} : vector<64x128xf32>, vector<128x128xf32>, vector<64x128xf32> -> vector<64x128xf32>
    %408 = vector.broadcast %1 : vector<1x128xf32> to vector<64x128xf32>
    %409 = arith.addf %407, %408 : vector<64x128xf32>
    %410 = math.tanh %409 : vector<64x128xf32>
    %411 = vector.broadcast %2 : vector<1x128xf32> to vector<64x128xf32>
    %412 = arith.mulf %410, %411 : vector<64x128xf32>
    %cst_223 = arith.constant dense<0.000000e+00> : vector<64xf32>
    %413 = vector.multi_reduction <add>, %412, %cst_223 [1] : vector<64x128xf32> to vector<64xf32>
    %414 = vector.shape_cast %413 : vector<64xf32> to vector<64x1xf32>
    %415 = vector.shape_cast %414 : vector<64x1xf32> to vector<8x8x1xf32>
    %cst_224 = arith.constant dense<0xFF800000> : vector<8x1xf32>
    %416 = vector.multi_reduction <maximumf>, %415, %cst_224 [0] : vector<8x8x1xf32> to vector<8x1xf32>
    %417 = vector.shape_cast %416 : vector<8x1xf32> to vector<1x8x1xf32>
    %418 = vector.broadcast %417 : vector<1x8x1xf32> to vector<8x8x1xf32>
    %419 = arith.subf %415, %418 : vector<8x8x1xf32>
    %420 = math.exp %419 : vector<8x8x1xf32>
    %cst_225 = arith.constant dense<0.000000e+00> : vector<8x1xf32>
    %421 = vector.multi_reduction <add>, %420, %cst_225 [0] : vector<8x8x1xf32> to vector<8x1xf32>
    %422 = vector.shape_cast %421 : vector<8x1xf32> to vector<1x8x1xf32>
    %423 = tpu.reciprocal %422 {approx = true} : vector<1x8x1xf32> -> vector<1x8x1xf32>
    %424 = vector.broadcast %423 : vector<1x8x1xf32> to vector<8x8x1xf32>
    %425 = arith.mulf %420, %424 : vector<8x8x1xf32>
    %426 = vector.broadcast %425 : vector<8x8x1xf32> to vector<8x8x128xf32>
    %427 = arith.mulf %426, %404 : vector<8x8x128xf32>
    %cst_226 = arith.constant dense<0.000000e+00> : vector<8x128xf32>
    %428 = vector.multi_reduction <add>, %427, %cst_226 [0] : vector<8x8x128xf32> to vector<8x128xf32>
    %c384 = arith.constant 384 : index
    %c0_227 = arith.constant 0 : index
    %429 = vector.load %arg3[%c384, %c0_227] : memref<512x128xf32, #tpu.memory_space<vmem>>, vector<128x128xf32>
    %cst_228 = arith.constant dense<0.000000e+00> : vector<8x128xf32>
    %430 = tpu.matmul %428, %429, %cst_228 {dimension_numbers = #tpu.dot_dimension_numbers<[1], [0], [0], [1], [0, 0, 1, 1], [], []>} : vector<8x128xf32>, vector<128x128xf32>, vector<8x128xf32> -> vector<8x128xf32>
    %431 = vector.broadcast %3 : vector<1x128xf32> to vector<8x128xf32>
    %432 = arith.addf %430, %431 : vector<8x128xf32>
    %c0_229 = arith.constant 0 : index
    %c0_230 = arith.constant 0 : index
    %433 = vector.load %arg5[%c0_229, %c0_230] : memref<8x128xf32, #tpu.memory_space<vmem>>, vector<8x128xf32>
    tpu.vector_store %arg5[%c0_229, %c0_230], %432 {strides = array<i32>} : memref<8x128xf32, #tpu.memory_space<vmem>>, vector<8x128xf32>,
    return
  }
  func.func @transform_0(%arg0: i32) -> (i32, i32, i32) {
    %c0_i32 = arith.constant 0 : i32
    %c0_i32_0 = arith.constant 0 : i32
    %c0_i32_1 = arith.constant 0 : i32
    return %c0_i32, %arg0, %c0_i32_0 : i32, i32, i32
  }
  func.func @transform_1(%arg0: i32) -> (i32, i32) {
    %c0_i32 = arith.constant 0 : i32
    %c0_i32_0 = arith.constant 0 : i32
    %c0_i32_1 = arith.constant 0 : i32
    return %c0_i32, %c0_i32_0 : i32, i32
  }
  func.func @transform_2(%arg0: i32) -> (i32, i32) {
    %c0_i32 = arith.constant 0 : i32
    %c0_i32_0 = arith.constant 0 : i32
    %c0_i32_1 = arith.constant 0 : i32
    return %c0_i32, %c0_i32_0 : i32, i32
  }
  func.func @transform_3(%arg0: i32) -> (i32, i32) {
    %c0_i32 = arith.constant 0 : i32
    %c0_i32_0 = arith.constant 0 : i32
    %c0_i32_1 = arith.constant 0 : i32
    return %c0_i32, %c0_i32_0 : i32, i32
  }
  func.func @transform_4(%arg0: i32) -> (i32, i32) {
    %c0_i32 = arith.constant 0 : i32
    %c0_i32_0 = arith.constant 0 : i32
    return %arg0, %c0_i32 : i32, i32
  }
}

</mosaic_0001>

<bundles_post_ra>
// kernel: tpu_custom_call.1
= control target key start
LH: loop header
LB: loop body
LE: loop exit
PB: predicated region body
PF: predicated region fallthrough
CT: control target
= control target key end

     0   :  { %s5245_s0 = inlined_call_operand.hbm [shape: f32[16,16,32], index: 0, kind: input, shape index: {}]   ;;  %s5246_s1 = inlined_call_operand.hbm [shape: f32[32,256], index: 1, kind: input, shape index: {}]   ;;  %s5247_s2 = inlined_call_operand.hbm [shape: f32[512,128], index: 2, kind: input, shape index: {}]   ;;  %s5248_s3 = inlined_call_operand.hbm [shape: f32[8,256], index: 3, kind: input, shape index: {}]   ;;  %s5249_s4 = inlined_call_operand.hbm [shape: f32[16,128], index: 4, kind: output, shape index: {}]  }
   0x1   :  { %5258 = sst [smem:[#allocation20_spill]] %s5246_s1 }
   0x2   :  { %9 = vsyncpa [#allocation6], 0 }
   0x3   :  { %11 = vsyncpa [#allocation6 + $0x1], 0 }
   0x4   :  { %12 = vsyncpa [#allocation9], 0 }
   0x5   :  { %13 = vsyncpa [#allocation12], 0 }
   0x6   :  { %14 = vsyncpa [#allocation7], 0 }
   0x7   :  { %16 = vsyncpa [#allocation7 + $0x1], 0  ;;  %s4398_s15 = smov 0   ;;  %s4400_s16 = smov 0  }
   0x8   :  { %s4402_s17 = smov 0   ;;  %s4404_s18 = smov 0  }
   0x9 LB: > { %s4419_s19 = sadd.s32 4294967295, %s4355_s18   ;;  %s2475_s20 = sadd.s32 4294967294, %s4355_s18   ;;  %s4355_s18 = sphi %s4404_s18, %s5283_s18   ;;  %s4351_s17 = sphi %s4402_s17, %s5287_s17   ;;  %s4347_s16 = sphi %s4400_s16, %s5286_s16   ;;  %s4343_s15 = sphi %s4398_s15, %s5285_s15  }
   0xa   : > { %s4423_s21 = sadd.s32 1, %s4355_s18   ;;  %s29_s22 = sadd.s32 1, %s4351_s17 }
   0xb   : > { %5259 = sst [smem:[#allocation18_spill]] %s4423_s21  ;;  %s26_s23 = ssub.s32 %s4355_s18, %s4423_s21 }
   0xc   : > { %p36_p0 = scmp.ne.s32.totalorder %s4351_s17, %s4347_s16  ;;  %p27_p1 = scmp.eq.s32.totalorder %s26_s23, 0 }
   0xd   : > { %p37_p2 = scmp.eq.s32.totalorder %s4355_s18, 0  ;;  %p42_p3 = scmp.ne.s32.totalorder %s4347_s16, %s4343_s15 }
   0xe   : > { %p5250_p4 = scmp.eq.s32.totalorder %s4419_s19, 0  ;;  %p129_p7 = scmp.eq.s32.totalorder %s4419_s19, 1 }
   0xf   : > { %s4435_s24 = scalar_select %p27_p1, %s4351_s17, %s29_s22  }
  0x10   : > { %p4437_p5 = por %p37_p2, %p36_p0  ;;  %p4443_p6 = por %p5250_p4, %p42_p3 }
  0x11   : > { %5260 = sst [smem:[#allocation19_spill]] %s4435_s24  ;;  %p135_p8 = scmp.eq.s32.totalorder %s2475_s20, 1 }
  0x12   : > { %s5261_s25 = scalar_select %p4437_p5, 1, 0 }
  0x13   : > { %s5262_s26 = scalar_select %p4443_p6, 1, 0 }
  0x14   : > { %p2476_p9 = scmp.ge.s32.totalorder %s4355_s18, 1  ;;  %p142_p10 = scmp.lt.s32.totalorder %s4355_s18, 3 }
  0x15   : > { %p4450_p11 = por %p129_p7, %p36_p0  ;;  %p4454_p12 = por %p135_p8, %p42_p3 }
  0x16   : > { %p4458_p13 = pnand %p2476_p9, %p142_p10  ;;  %s4357_s30 = smov [#allocation8]  }
  0x17   : > { %s5263_s27 = scalar_select %p4450_p11, 1, 0 }
  0x18   : > { %s5264_s28 = scalar_select %p4454_p12, 1, 0 }
  0x19   : > { %s5265_s29 = scalar_select %p4458_p13, 1, 0 }
  0x1a   : > { %p3965_p1 = pneg %p4458_p13  ;;  %s154_s5 = sshll.u32 %s4357_s30, 4  ;;  %s155_s5 = int_to_ptr.vmem [resolvable:$true] %s154_s5 }
  0x1b   : > { %s4358_s7 = smov [#allocation10]   ;;  %s5267_s1 = sld [smem:[#allocation20_spill]] }
  0x1c   : > { %p4466_p2 = pnand %p3965_p1, %p5250_p4  ;;  %s167_s8 = sshll.u32 %s4358_s7, 4  ;;  %s168_s8 = int_to_ptr.vmem [resolvable:$true] %s167_s8 }
  0x1e   : > { %p4480_p8 = pneg %p4466_p2 }
  0x21   : > { %s4167_s11 = scalar_lea.hbm %s5267_s1, 1024 }
  0x22   : > { %p4168_p7 = scmp.ne.s32.totalorder %s5267_s1, %s4167_s11  ;;  %p4174_p1 = scmp.lt.u32.totalorder %s4167_s11, %s5267_s1 }
  0x24   : > { %p4170_p9 = pnand %p4480_p8, %p4168_p7 }
  0x26   : > { %p4171_p10 = pneg %p4170_p9 }
  0x28   : > { %p4176_p0 = pnand %p4174_p1, %p4171_p10 }
  0x2a   : > { %4179 = shalt.err (!%p4176_p0)
}
  0x2b   : > { %s4180_s23 = scalar_lea.vmem %s155_s5, 1024  ;;  %p4188_p11 = scmp.lt.s32.totalorder %s155_s5, %s155_s5 }
  0x2c   : > { %p4181_p4 = scmp.ne.s32.totalorder %s155_s5, %s4180_s23  ;;  %p4189_p6 = scmp.lt.s32.totalorder %s4180_s23, %s4180_s23 }
  0x2e   : > { %p4183_p3 = pnand %p4181_p4, %p4480_p8  ;;  %p4190_p13 = por %p4189_p6, %p4188_p11 }
  0x30   : > { %p4184_p12 = pneg %p4183_p3 }
  0x32   : > { %p4191_p5 = pnand %p4190_p13, %p4184_p12 }
  0x34   : > { %4194 = shalt.err (!%p4191_p5)
}
  0x35   : > { %s5255_s30 = smov 256   ;;  %s4360_s7 = smov 16  }
  0x36   : > { %3968 = dma.hbm_to_vmem [thread:$0]  (!%p4466_p2), %s5267_s1, 1024, %s155_s5, [#allocation9], %s5255_s30, %s5255_s30, %s4360_s7  }
  0x37   : > { %p5269_p4 = scmp.ne.s32.totalorder %s5261_s25, 0  ;;  %p5270_p0 = scmp.lt.s32.totalorder %s4355_s18, 2 }
  0x38   : > { %s4195_s20 = scalar_lea.hbm %s5247_s2, 8192 }
  0x39   : > { %p4502_p3 = pnand %p5270_p0, %p5269_p4  ;;  %p4196_p5 = scmp.ne.s32.totalorder %s5247_s2, %s4195_s20 }
  0x3a   : > { %p4202_p12 = scmp.lt.u32.totalorder %s4195_s20, %s5247_s2 }
  0x3b   : > { %s5271_s11 = scalar_select %p4502_p3, 1, 0 }
  0x3c   : > { %p4198_p6 = pnand %p4196_p5, %p4480_p8 }
  0x3e   : > { %p4199_p11 = pneg %p4198_p6 }
  0x40   : > { %p4204_p13 = pnand %p4202_p12, %p4199_p11 }
  0x42   : > { %4207 = shalt.err (!%p4204_p13)
}
  0x43   : > { %s4208_s25 = scalar_lea.vmem %s168_s8, 8192  ;;  %p4216_p1 = scmp.lt.s32.totalorder %s168_s8, %s168_s8 }
  0x44   : > { %p4209_p7 = scmp.ne.s32.totalorder %s168_s8, %s4208_s25  ;;  %p4217_p4 = scmp.lt.s32.totalorder %s4208_s25, %s4208_s25 }
  0x46   : > { %p4211_p9 = pnand %p4209_p7, %p4480_p8  ;;  %p4218_p0 = por %p4217_p4, %p4216_p1 }
  0x48   : > { %p4212_p10 = pneg %p4211_p9 }
  0x4a   : > { %p4219_p3 = pnand %p4218_p0, %p4212_p10 }
  0x4c   : > { %4222 = shalt.err (!%p4219_p3)
}
  0x4d   : > { %s4361_s7 = smov 128   ;;  %s4362_s10 = smov 8  }
  0x4e   : > { %3971 = dma.hbm_to_vmem [thread:$0]  (!%p4466_p2), %s5247_s2, 8192, %s168_s8, [#allocation9], %s4361_s7, %s4361_s7, %s4362_s10  }
  0x4f   : > { %s4363_s20 = smov [#allocation11]   ;;  %s192_s23 = sand.u32 1, %s4351_s17  }
  0x50   : > { %s181_s22 = sshll.u32 %s4363_s20, 4  ;;  %s4223_s25 = scalar_lea.hbm %s5248_s3, 256  ;;  %s182_s22 = int_to_ptr.vmem [resolvable:$true] %s181_s22 }
  0x51   : > { %p4224_p3 = scmp.ne.s32.totalorder %s5248_s3, %s4223_s25  ;;  %p4230_p11 = scmp.lt.u32.totalorder %s4223_s25, %s5248_s3 }
  0x53   : > { %p4226_p5 = pnand %p4224_p3, %p4480_p8 }
  0x55   : > { %p4227_p6 = pneg %p4226_p5 }
  0x57   : > { %p4232_p12 = pnand %p4230_p11, %p4227_p6 }
  0x59   : > { %4235 = shalt.err (!%p4232_p12)
}
  0x5a   : > { %s4236_s8 = scalar_lea.vmem %s182_s22, 256  ;;  %p4244_p10 = scmp.lt.s32.totalorder %s182_s22, %s182_s22 }
  0x5b   : > { %p4237_p13 = scmp.ne.s32.totalorder %s182_s22, %s4236_s8  ;;  %p4245_p1 = scmp.lt.s32.totalorder %s4236_s8, %s4236_s8 }
  0x5d   : > { %p4239_p7 = pnand %p4237_p13, %p4480_p8  ;;  %p4246_p4 = por %p4245_p1, %p4244_p10 }
  0x5f   : > { %p4240_p9 = pneg %p4239_p7 }
  0x61   : > { %p4247_p0 = pnand %p4246_p4, %p4240_p9 }
  0x63   : > { %4250 = shalt.err (!%p4247_p0)
}
  0x64   : > { %3974 = dma.hbm_to_vmem [thread:$0]  (!%p4466_p2), %s5248_s3, 256, %s182_s22, [#allocation12]  }
  0x65   : > { %s2481_s21 = sshll.u32 %s192_s23, 7  ;;  %s2482_s24 = sshll.u32 %s4355_s18, 7 }
  0x66   : > { %s4550_s13 = scalar_lea.hbm %s5245_s0, %s2482_s24  ;;  %s196_s20 = scalar_lea.vmem [#allocation5], %s2481_s21 }
  0x67   : > { %s202_s6 = sshll.u32 %s196_s20, 4  ;;  %s4554_s9 = scalar_lea.sflag [#allocation6], %s192_s23  ;;  %s4552_s6 = int_to_ptr.vmem [resolvable:$true] %s202_s6 }
  0x68   : > { %s4251_s5 = scalar_lea.hbm %s4550_s13, 2048  ;;  %p5272_p2 = scmp.ne.s32.totalorder %s5271_s11, 0 }
  0x69   : > { %p4252_p8 = scmp.ne.s32.totalorder %s4550_s13, %s4251_s5  ;;  %s4256_s8 = scalar_lea.hbm %s5245_s0, 4096 }
  0x6a   : > { %p4253_p3 = pneg %p5272_p2  ;;  %p4257_p11 = scmp.lt.u32.totalorder %s4550_s13, %s5245_s0 }
  0x6b   : > { %p4258_p12 = scmp.lt.u32.totalorder %s4256_s8, %s4251_s5  ;;  %p4260_p7 = scmp.lt.u32.totalorder %s4251_s5, %s4550_s13 }
  0x6c   : > { %p4254_p5 = pnand %p4253_p3, %p4252_p8 }
  0x6d   : > { %p4259_p13 = por %p4258_p12, %p4257_p11 }
  0x6e   : > { %p4255_p6 = pneg %p4254_p5 }
  0x6f   : > { %p4261_p9 = por %p4260_p7, %p4259_p13 }
  0x71   : > { %p4262_p10 = pnand %p4261_p9, %p4255_p6 }
  0x73   : > { %4265 = shalt.err (!%p4262_p10)
}
  0x74   : > { %s4266_s23 = scalar_lea.vmem %s4552_s6, 2048  ;;  %s4364_s21 = smov [#allocation5]  }
  0x75   : > { %p4267_p1 = scmp.ne.s32.totalorder %s4552_s6, %s4266_s23  ;;  %s4271_s24 = sshll.u32 %s4364_s21, 4  ;;  %s4272_s24 = int_to_ptr.vmem [resolvable:$false] %s4271_s24 }
  0x76   : > { %s4273_s12 = scalar_lea.vmem %s4272_s24, 4096  ;;  %p4274_p8 = scmp.lt.s32.totalorder %s4552_s6, %s4272_s24 }
  0x77   : > { %p4269_p4 = pnand %p4267_p1, %p4253_p3  ;;  %p4275_p5 = scmp.lt.s32.totalorder %s4273_s12, %s4266_s23 }
  0x79   : > { %p4270_p0 = pneg %p4269_p4  ;;  %p4276_p11 = por %p4275_p5, %p4274_p8 }
  0x7b   : > { %p4277_p12 = pnand %p4276_p11, %p4270_p0 }
  0x7d   : > { %4280 = shalt.err (!%p4277_p12)
}
  0x7e   : > { %s5273_s14 = smov 256   ;;  %p5274_p3 = scmp.ne.s32.totalorder %s5265_s29, 0 }
  0x7f   : > { %3978 = dma.hbm_to_vmem [thread:$0]  (!%p5272_p2), %s4550_s13, 2048, %s4552_s6, %s4554_s9, %s5273_s14, %s4361_s7, %s4362_s10  }
  0x80   : > { %214 = sbr.rel (%p5274_p3) target bundleno = 6902 (0x1af6), region = 36  ;;  %s4588_s20 = sand.u32 (!%p5274_p3), 1, %s4347_s16  }
  0x81   : > { %s2484_s5 = sshll.u32 (!%p5274_p3), %s4588_s20, 7  ;;  %s217_s22 = scalar_lea.sflag (!%p5274_p3), [#allocation6], %s4588_s20 }
  0x82   : > { %s4592_s25 = scalar_lea.vmem (!%p5274_p3), [#allocation5], %s2484_s5  ;;  %p5275_p6 = scmp.ne.s32.totalorder (!%p5274_p3), %s5262_s26, 0 }
  0x87   : > { %4326 = dma.done.wait (%p5275_p6), %s217_s22, 2048  }
  0x88   : > { %4328 = vsyncadd (%p5275_p6), %s217_s22, 4294965248  ;;  %p5276_p2 = scmp.eq.s32.totalorder %s4419_s19, 0 }
  0x8a   : > { %4330 = dma.done.wait (%p5276_p2), [#allocation9], 9216   ;;  %p5277_p13 = pmov %p5276_p2 }
  0x8b   : > { %p5278_p7 = pmov %p5276_p2 }
  0x8c   : > { %4332 = vsyncadd (%p5277_p13), [#allocation9], 4294958080 }
  0x8d   : > { %4334 = dma.done.wait (%p5278_p7), [#allocation12], 256   ;;  %p5279_p9 = pmov %p5276_p2 }
  0x8e   : > { %v4365_v0 = vmov 0.0   ;;  %v4366_v1 = vmov 0.0|0.0   ;;  %vm4367_vm0 = vmmov 0   ;;  %v278_v2 = vld [vmem:[#allocation8 + $0x8] sm:$0xff]  ;;  %v280_v3 = vld [vmem:[#allocation8 + $0x18] sm:$0xff]  ;;  %v277_v4 = vld [vmem:[#allocation8] sm:$0xff]  ;;  %v286_v54 = vlaneseq }
  0x8f   : > { %4336 = vsyncadd (%p5279_p9), [#allocation12], 4294967040  ;;  %409 = vmatprep.mubr.f32.mxu0 %v4365_v0  ;;  %3677 = vmatprep.subr.bf16.mxu1 %v4366_v1  ;;  %v3477_v5 = vpack.c.bf16 %v280_v3, %v278_v2  ;;  %v279_v6 = vld [vmem:[#allocation8 + $0x10] sm:$0xff]  ;;  %v282_v7 = vld [vmem:[#allocation8 + $0x28] sm:$0xff]  ;;  %vm296_vm1 = vcmask 261120   ;;  %s4369_s26 = smov 64  }
  0x90   : > { %3150 = vmatprep.mubr.msk.f32.mxu1 %vm4367_vm0, %v4365_v0  ;;  %v284_v8 = vld [vmem:[#allocation8 + $0x38] sm:$0xff]  ;;  %v3479_v9 = vpack.c.bf16 %v279_v6, %v277_v4  ;;  %v281_v11 = vld [vmem:[#allocation8 + $0x20] sm:$0xff]  ;;  %v283_v12 = vld [vmem:[#allocation8 + $0x30] sm:$0xff]  ;;  %v287_v55 = vshrl.u32 %v286_v54, 7  ;;  %s4370_s29 = smov 32   ;;  %s4371_s11 = smov 96  }
  0x91   : > { %v3481_v10 = vpack.c.bf16 %v284_v8, %v282_v7  ;;  %3478 = vmatprep.subr.bf16.mxu0 %v3477_v5  ;;  %v3483_v13 = vpack.c.bf16 %v283_v12, %v281_v11  ;;  %v511_v14 = vld [vmem:[#allocation10] sm:$0xff]  ;;  %v512_v15 = vld [vmem:[#allocation10 + $0x8] sm:$0xff]  ;;  %v513_v18 = vld [vmem:[#allocation10 + $0x10] sm:$0xff]  ;;  %s2488_s7 = sshll.u32 %s4588_s20, 3  ;;  %s2522_s10 = sshll.u32 %s4419_s19, 7 }
  0x92   : > { %3480 = vmatpush1.bf16.msra.mxu0 %v3479_v9  ;;  %v261_v16 = vld [vmem:[%s4592_s25] sm:$0xff]  ;;  %v4611_v17 = vpack.c.bf16 %v512_v15, %v511_v14  ;;  %v514_v19 = vld [vmem:[#allocation10 + $0x18] sm:$0xff]  ;;  %v262_v20 = vld [vmem:[%s4592_s25 + $0x8] sm:$0xff]  ;;  %v292_v56 = vsub.s32 1, %v287_v55  ;;  %s256_s13 = scalar_lea.vmem [#allocation13], %s2488_s7  ;;  %s5201_s1 = scalar_lea.hbm %s5249_s4, %s2522_s10 }
  0x93   : > { %3482 = vmatprep.subr.bf16.mxu0 %v3481_v10  ;;  %v4618_v21 = vpack.c.bf16 %v514_v19, %v513_v18  ;;  %v515_v22 = vld [vmem:[#allocation10 + $0x20] sm:$0xff]  ;;  %v516_v23 = vld [vmem:[#allocation10 + $0x28] sm:$0xff]  ;;  %v263_v24 = vld [vmem:[%s4592_s25 + $0x10] sm:$0xff]  ;;  %v288_v18 = vsub.s32 0, %v287_v55  ;;  %s2376_s6 = sshll.u32 %s256_s13, 4  ;;  %s2363_s30 = scalar_lea.sflag [#allocation7], %s4588_s20  ;;  %s5203_s6 = int_to_ptr.vmem [resolvable:$true] %s2376_s6 }
  0x94   : > { %v4625_v25 = vpack.c.bf16 %v516_v23, %v515_v22  ;;  %v517_v26 = vld [vmem:[#allocation10 + $0x30] sm:$0xff]  ;;  %v518_v27 = vld [vmem:[#allocation10 + $0x38] sm:$0xff]  ;;  %v519_v30 = vld [vmem:[#allocation10 + $0x40] sm:$0xff]  ;;  %s4281_s23 = scalar_lea.vmem %s5203_s6, 128  ;;  %p5280_p1 = scmp.ne.s32.totalorder %s5263_s27, 0 }
  0x95   : > { %v264_v28 = vld [vmem:[%s4592_s25 + $0x18] sm:$0xff]  ;;  %v4632_v29 = vpack.c.bf16 %v518_v27, %v517_v26  ;;  %v520_v31 = vld [vmem:[#allocation10 + $0x48] sm:$0xff]  ;;  %v265_v32 = vld [vmem:[%s4592_s25 + $0x20] sm:$0xff]  ;;  %p4282_p10 = scmp.ne.s32.totalorder %s5203_s6, %s4281_s23  ;;  %s4372_s19 = smov [#allocation13]  }
  0x96   : > { %3484 = vmatpush1.bf16.msra.mxu0 %v3483_v13  ;;  %v4639_v33 = vpack.c.bf16 %v520_v31, %v519_v30  ;;  %v521_v34 = vld [vmem:[#allocation10 + $0x50] sm:$0xff]  ;;  %v522_v35 = vld [vmem:[#allocation10 + $0x58] sm:$0xff]  ;;  %v266_v36 = vld [vmem:[%s4592_s25 + $0x28] sm:$0xff]  ;;  %s4285_s21 = sshll.u32 %s4372_s19, 4  ;;  %s4286_s21 = int_to_ptr.vmem [resolvable:$false] %s4285_s21 }
  0x97   : > { %3485 = vmatprep.subr.bf16.mxu0 %v4366_v1  ;;  %v4646_v37 = vpack.c.bf16 %v522_v35, %v521_v34  ;;  %v523_v38 = vld [vmem:[#allocation10 + $0x60] sm:$0xff]  ;;  %v524_v39 = vld [vmem:[#allocation10 + $0x68] sm:$0xff]  ;;  %v267_v40 = vld [vmem:[%s4592_s25 + $0x30] sm:$0xff]  ;;  %v507_v34 = vand.u32 127, %v286_v54  ;;  %v4368_v35 = vmov 1.0   ;;  %p4283_p4 = pnand %p4282_p10, %p5280_p1  ;;  %s4287_s24 = scalar_lea.vmem %s4286_s21, 256 }
  0x98   : > { %v4653_v41 = vpack.c.bf16 %v524_v39, %v523_v38  ;;  %v525_v42 = vld [vmem:[#allocation10 + $0x70] sm:$0xff]  ;;  %v526_v43 = vld [vmem:[#allocation10 + $0x78] sm:$0xff]  ;;  %v269_v46 = vld [vmem:[%s4592_s25 + $0x40] sm:$0xff]  ;;  %p4288_p8 = scmp.lt.s32.totalorder %s5203_s6, %s4286_s21  ;;  %p4289_p5 = scmp.lt.s32.totalorder %s4287_s24, %s4281_s23 }
  0x99   : > { %2489 = vmatmul.mubr.msk.f32.vlgmr.msra.gmra.mrb[0].mxu0 %vm296_vm1, %v261_v16  ;;  %v268_v44 = vld [vmem:[%s4592_s25 + $0x38] sm:$0xff]  ;;  %v4660_v45 = vpack.c.bf16 %v526_v43, %v525_v42  ;;  %v270_v47 = vld [vmem:[%s4592_s25 + $0x48] sm:$0xff]  ;;  %v271_v48 = vld [vmem:[%s4592_s25 + $0x50] sm:$0xff]  ;;  %vm508_vm2 = vcmp.ge.s32.totalorder %v507_v34, 96  ;;  %p4284_p0 = pneg %p4283_p4 }
  0x9a   : > { %3487 = vmatpush3.bf16.msra.mxu0 %v4611_v17  ;;  %414 = vmatprep.mubr.f32.mxu0 %v4365_v0  ;;  %v272_v49 = vld [vmem:[%s4592_s25 + $0x58] sm:$0xff]  ;;  %v273_v50 = vld [vmem:[%s4592_s25 + $0x60] sm:$0xff]  ;;  %v274_v51 = vld [vmem:[%s4592_s25 + $0x68] sm:$0xff]  ;;  %v4733_v39 = vsel %vm508_vm2, -1.0, %v4365_v0  ;;  %p4290_p11 = por %p4289_p5, %p4288_p8 }
  0x9b   : > { %3488 = vmatprep.subr.bf16.mxu0 %v4366_v1  ;;  %v275_v52 = vld [vmem:[%s4592_s25 + $0x70] sm:$0xff]  ;;  %v276_v53 = vld [vmem:[%s4592_s25 + $0x78] sm:$0xff]  ;;  %v257_v57 = vld [vmem:[#allocation11] ss:$8 sm:$0x3] }
  0x9c   : > { %v293_v58 = vrot.slane %v257_v57, %v292_v56  ;;  %v4725_v23 = vrot.slane %v257_v57, %v288_v18  ;;  %p4291_p12 = pnand %p4290_p11, %p4284_p0 }
  0x9d   : > { %2490 = vmatmul.mubr.msk.f32.gmra.mrb[2].mxu0 %vm296_vm1, %v262_v20 }
  0x9e   : > { %419 = vmatprep.mubr.f32.mxu0 %v4365_v0  ;;  %3490 = vmatpush3.bf16.msra.mxu0 %v4618_v21 }
  0x9f   : > { %3491 = vmatprep.subr.bf16.mxu0 %v4366_v1 }
  0xa1   : > { %2491 = vmatmul.mubr.msk.f32.gmra.mrb[4].mxu0 %vm296_vm1, %v263_v24 }
  0xa2   : > { %424 = vmatprep.mubr.f32.mxu0 %v4365_v0  ;;  %3493 = vmatpush3.bf16.msra.mxu0 %v4625_v25 }
  0xa3   : > { %3494 = vmatprep.subr.bf16.mxu0 %v4366_v1 }
  0xa5   : > { %2492 = vmatmul.mubr.msk.f32.gmra.mrb[6].mxu0 %vm296_vm1, %v264_v28 }
  0xa6   : > { %429 = vmatprep.mubr.f32.mxu0 %v4365_v0  ;;  %3496 = vmatpush3.bf16.msra.mxu0 %v4632_v29 }
  0xa7   : > { %3497 = vmatprep.subr.bf16.mxu0 %v4366_v1 }
  0xa9   : > { %2493 = vmatmul.mubr.msk.f32.gmra.mrb[8].mxu0 %vm296_vm1, %v265_v32 }
  0xaa   : > { %434 = vmatprep.mubr.f32.mxu0 %v4365_v0  ;;  %3499 = vmatpush3.bf16.msra.mxu0 %v4639_v33 }
  0xab   : > { %3500 = vmatprep.subr.bf16.mxu0 %v4366_v1 }
  0xad   : > { %2494 = vmatmul.mubr.msk.f32.gmra.mrb[10].mxu0 %vm296_vm1, %v266_v36  ;;  %v4730_v36 = vsel %vm508_vm2, 2.0, %v4368_v35 }
  0xae   : > { %439 = vmatprep.mubr.f32.mxu0 %v4365_v0  ;;  %3502 = vmatpush3.bf16.msra.mxu0 %v4646_v37 }
  0xaf   : > { %3503 = vmatprep.subr.bf16.mxu0 %v4366_v1 }
  0xb1   : > { %2495 = vmatmul.mubr.msk.f32.gmra.mrb[12].mxu0 %vm296_vm1, %v267_v40 }
  0xb2   : > { %444 = vmatprep.mubr.f32.mxu0 %v4365_v0  ;;  %3505 = vmatpush3.bf16.msra.mxu0 %v4653_v41 }
  0xb3   : > { %3506 = vmatprep.subr.bf16.mxu0 %v4366_v1 }
  0xb5   : > { %2496 = vmatmul.mubr.msk.f32.gmra.mrb[14].mxu0 %vm296_vm1, %v268_v44 }
  0xb6   : > { %449 = vmatprep.mubr.f32.mxu0 %v4365_v0  ;;  %3508 = vmatpush3.bf16.msra.mxu0 %v4660_v45 }
  0xb7   : > { %3509 = vmatprep.subr.bf16.mxu0 %v4366_v1 }
  0xb9   : > { %2497 = vmatmul.mubr.msk.f32.gmra.mrb[16].mxu0 %vm296_vm1, %v269_v46 }
  0xba   : > { %454 = vmatprep.mubr.f32.mxu0 %v4365_v0 }
  0xbd   : > { %2498 = vmatmul.mubr.msk.f32.gmra.mrb[18].mxu0 %vm296_vm1, %v270_v47 }
  0xbe   : > { %459 = vmatprep.mubr.f32.mxu0 %v4365_v0 }
  0xc1   : > { %2499 = vmatmul.mubr.msk.f32.gmra.mrb[20].mxu0 %vm296_vm1, %v271_v48 }
  0xc2   : > { %464 = vmatprep.mubr.f32.mxu0 %v4365_v0 }
  0xc5   : > { %2500 = vmatmul.mubr.msk.f32.gmra.mrb[22].mxu0 %vm296_vm1, %v272_v49 }
  0xc6   : > { %469 = vmatprep.mubr.f32.mxu0 %v4365_v0 }
  0xc9   : > { %2501 = vmatmul.mubr.msk.f32.gmra.mrb[24].mxu0 %vm296_vm1, %v273_v50 }
  0xca   : > { %474 = vmatprep.mubr.f32.mxu0 %v4365_v0 }
  0xcd   : > { %2502 = vmatmul.mubr.msk.f32.gmra.mrb[26].mxu0 %vm296_vm1, %v274_v51 }
  0xce   : > { %479 = vmatprep.mubr.f32.mxu0 %v4365_v0 }
  0xd1   : > { %2503 = vmatmul.mubr.msk.f32.gmra.mrb[28].mxu0 %vm296_vm1, %v275_v52 }
  0xd2   : > { %484 = vmatprep.mubr.f32.mxu0 %v4365_v0 }
  0xd5   : > { %2504 = vmatmul.mubr.msk.f32.gmra.mrb[30].mxu0 %vm296_vm1, %v276_v53 }
  0xd6   : > { %2870 = vmatprep.mubr.msk.f32.mxu0 %vm4367_vm0, %v4365_v0 }
  0xd9   : > { %2871 = vmatmul.mubr.f32.vlgmr.msra.gmra.mrb[0].mxu0 %v4365_v0 }
  0xda   : > { %3511 = vmatpush3.bf16.msra.mxu0 %v4611_v17  ;;  %2905 = vmatprep.mubr.msk.f32.mxu0 %vm4367_vm0, %v4365_v0 }
  0xdb   : > { %3512 = vmatprep.subr.bf16.mxu0 %v4366_v1 }
  0xde   : > { %3514 = vmatpush3.bf16.msra.mxu0 %v4618_v21 }
  0xdf   : > { %3515 = vmatprep.subr.bf16.mxu0 %v4366_v1 }
  0xe2   : > { %3517 = vmatpush3.bf16.msra.mxu0 %v4625_v25 }
  0xe3   : > { %3518 = vmatprep.subr.bf16.mxu0 %v4366_v1 }
  0xe6   : > { %3520 = vmatpush3.bf16.msra.mxu0 %v4632_v29 }
  0xe7   : > { %3521 = vmatprep.subr.bf16.mxu0 %v4366_v1 }
  0xea   : > { %3523 = vmatpush3.bf16.msra.mxu0 %v4639_v33 }
  0xeb   : > { %3524 = vmatprep.subr.bf16.mxu0 %v4366_v1 }
  0xee   : > { %3526 = vmatpush3.bf16.msra.mxu0 %v4646_v37 }
  0xef   : > { %3527 = vmatprep.subr.bf16.mxu0 %v4366_v1 }
  0xf2   : > { %3529 = vmatpush3.bf16.msra.mxu0 %v4653_v41 }
  0xf3   : > { %3530 = vmatprep.subr.bf16.mxu0 %v4366_v1 }
  0xf6   : > { %3532 = vmatpush3.bf16.msra.mxu0 %v4660_v45 }
  0xf7   : > { %3533 = vmatprep.subr.bf16.mxu0 %v4366_v1 }
 0x18c   : > { %v451_v59 = vpop.f32.mrb[16].mxu0 }
 0x18d   : > { %v452_v60 = vpop.f32.mrb[17].mxu0 }
 0x18e   : > { %v4711_v61 = vadd.f32 %v452_v60, %v293_v58 }
 0x190   : > { %v456_v62 = vpop.f32.mrb[18].mxu0 }
 0x191   : > { %v457_v63 = vpop.f32.mrb[19].mxu0 }
 0x192   : > { %v4713_v2 = vadd.f32 %v457_v63, %v293_v58 }
 0x194   : > { %v461_v3 = vpop.f32.mrb[20].mxu0 }
 0x195   : > { %v462_v4 = vpop.f32.mrb[21].mxu0 }
 0x196   : > { %v4715_v5 = vadd.f32 %v462_v4, %v293_v58 }
 0x198   : > { %v466_v6 = vpop.f32.mrb[22].mxu0 }
 0x199   : > { %v467_v7 = vpop.f32.mrb[23].mxu0 }
 0x19a   : > { %v4717_v8 = vadd.f32 %v467_v7, %v293_v58 }
 0x19c   : > { %v471_v9 = vpop.f32.mrb[24].mxu0 }
 0x19d   : > { %v472_v10 = vpop.f32.mrb[25].mxu0 }
 0x19e   : > { %v4719_v11 = vadd.f32 %v472_v10, %v293_v58 }
 0x1a0   : > { %v476_v12 = vpop.f32.mrb[26].mxu0 }
 0x1a1   : > { %v477_v13 = vpop.f32.mrb[27].mxu0 }
 0x1a2   : > { %v4721_v14 = vadd.f32 %v477_v13, %v293_v58 }
 0x1a4   : > { %v481_v15 = vpop.f32.mrb[28].mxu0 }
 0x1a5   : > { %v482_v16 = vpop.f32.mrb[29].mxu0 }
 0x1a6   : > { %v4723_v19 = vadd.f32 %v482_v16, %v293_v58 }
 0x1a8   : > { %v486_v20 = vpop.f32.mrb[30].mxu0 }
 0x1a9   : > { %v487_v22 = vpop.f32.mrb[31].mxu0 }
 0x1aa   : > { %v4727_v24 = vadd.f32 %v487_v22, %v293_v58 }
 0x1ac   : > { %v594_v26 = vpop.f32.mrb[0].mxu0 }
 0x1ad   : > { %v3925_v27 = vadd.f32 %v594_v26, %v4725_v23  ;;  %v2872_v28 = vpop.f32.mrb[1].mxu0 }
 0x1af   : > { %v2505_v30 = vmul.f32 -1.442695, %v3925_v27 }
 0x1b1   : > { %4037 = vpow2.f32 %v2505_v30 }
 0x1bb   : > { %v4038_v31 = vpop.eup %4037 }
 0x1bc   : > { %v602_v32 = vadd.f32 1.0, %v4038_v31 }
 0x1be   : > { %4039 = vrcp.f32 %v602_v32 }
 0x1c8   : > { %v4040_v38 = vpop.eup %4039 }
 0x1c9   : > { %v605_v40 = vmul.f32 %v4040_v38, %v4730_v36 }
 0x1cb   : > { %v606_v42 = vadd.f32 %v605_v40, %v4733_v39 }
 0x1cd   : > { %609 = vrot.lane.b32.xlu1 %v606_v42, %s4369_s26  ;;  %607 = vrot.lane.b32.xlu0 %v606_v42, %s4370_s29  ;;  %v613_v46 = vmul.f32 0.0, %v606_v42 }
 0x1d1   : > { %611 = vrot.lane.b32.xlu0 %v606_v42, %s4371_s11 }
 0x23f   : > { %v608_v43 = vpop.permute.xlu0 %607  ;;  %v610_v50 = vpop.permute.xlu1 %609 }
 0x243   : > { %v612_v44 = vpop.permute.xlu0 %611 }
 0x244   : > { %v614_v47 = vmul.f32 %v612_v44, %v608_v43 }
 0x246   : > { %v615_v48 = vadd.f32 %v614_v47, %v613_v46 }
 0x248   : > { %4041 = vtanh.f32 %v615_v48 }
 0x252   : > { %v4042_v49 = vpop.eup %4041 }
 0x253   : > { %v4740_v51 = vmul.f32 %v4042_v49, %v610_v50 }
 0x255   : > { %2906 = vmatmul.mubr.f32.vlgmr.msra.gmra.mrb[2].mxu0 %v4740_v51 }
 0x256   : > { %3535 = vmatpush3.bf16.msra.mxu0 %v4611_v17  ;;  %2940 = vmatprep.mubr.msk.f32.mxu0 %vm4367_vm0, %v4365_v0 }
 0x257   : > { %3536 = vmatprep.subr.bf16.mxu0 %v4366_v1 }
 0x25a   : > { %3538 = vmatpush3.bf16.msra.mxu0 %v4618_v21 }
 0x25b   : > { %3539 = vmatprep.subr.bf16.mxu0 %v4366_v1 }
 0x25e   : > { %3541 = vmatpush3.bf16.msra.mxu0 %v4625_v25 }
 0x25f   : > { %3542 = vmatprep.subr.bf16.mxu0 %v4366_v1 }
 0x262   : > { %3544 = vmatpush3.bf16.msra.mxu0 %v4632_v29 }
 0x263   : > { %3545 = vmatprep.subr.bf16.mxu0 %v4366_v1 }
 0x266   : > { %3547 = vmatpush3.bf16.msra.mxu0 %v4639_v33 }
 0x267   : > { %3548 = vmatprep.subr.bf16.mxu0 %v4366_v1 }
 0x26a   : > { %3550 = vmatpush3.bf16.msra.mxu0 %v4646_v37 }
 0x26b   : > { %3551 = vmatprep.subr.bf16.mxu0 %v4366_v1 }
 0x26e   : > { %3553 = vmatpush3.bf16.msra.mxu0 %v4653_v41 }
 0x26f   : > { %3554 = vmatprep.subr.bf16.mxu0 %v4366_v1 }
 0x272   : > { %3556 = vmatpush3.bf16.msra.mxu0 %v4660_v45 }
 0x273   : > { %3557 = vmatprep.subr.bf16.mxu0 %v4366_v1 }
 0x328   : > { %v687_v52 = vpop.f32.mrb[2].mxu0 }
 0x329   : > { %v3926_v53 = vadd.f32 %v687_v52, %v4725_v23  ;;  %v2907_v54 = vpop.f32.mrb[3].mxu0 }
 0x32b   : > { %v2506_v55 = vmul.f32 -1.442695, %v3926_v53 }
 0x32d   : > { %4043 = vpow2.f32 %v2506_v55 }
 0x337   : > { %v4044_v56 = vpop.eup %4043 }
 0x338   : > { %v695_v57 = vadd.f32 1.0, %v4044_v56 }
 0x33a   : > { %4045 = vrcp.f32 %v695_v57 }
 0x344   : > { %v4046_v58 = vpop.eup %4045 }
 0x345   : > { %v698_v59 = vmul.f32 %v4046_v58, %v4730_v36 }
 0x347   : > { %v699_v60 = vadd.f32 %v698_v59, %v4733_v39 }
 0x349   : > { %704 = vrot.lane.b32.xlu0 %v699_v60, %s4371_s11  ;;  %700 = vrot.lane.b32.xlu1 %v699_v60, %s4370_s29  ;;  %v706_v3 = vmul.f32 %v699_v60, %v615_v48 }
 0x34d   : > { %702 = vrot.lane.b32.xlu1 %v699_v60, %s4369_s26 }
 0x3bb   : > { %v705_v62 = vpop.permute.xlu0 %704  ;;  %v701_v63 = vpop.permute.xlu1 %700 }
 0x3bc   : > { %v707_v4 = vmul.f32 %v705_v62, %v701_v63 }
 0x3be   : > { %v708_v6 = vadd.f32 %v707_v4, %v706_v3 }
 0x3bf   : > { %v703_v9 = vpop.permute.xlu1 %702 }
 0x3c0   : > { %4047 = vtanh.f32 %v708_v6 }
 0x3ca   : > { %v4048_v7 = vpop.eup %4047 }
 0x3cb   : > { %v4767_v10 = vmul.f32 %v4048_v7, %v703_v9 }
 0x3cd   : > { %2941 = vmatmul.mubr.f32.vlgmr.msra.gmra.mrb[4].mxu0 %v4767_v10 }
 0x3ce   : > { %3559 = vmatpush3.bf16.msra.mxu0 %v4611_v17  ;;  %2975 = vmatprep.mubr.msk.f32.mxu0 %vm4367_vm0, %v4365_v0 }
 0x3cf   : > { %3560 = vmatprep.subr.bf16.mxu0 %v4366_v1 }
 0x3d2   : > { %3562 = vmatpush3.bf16.msra.mxu0 %v4618_v21 }
 0x3d3   : > { %3563 = vmatprep.subr.bf16.mxu0 %v4366_v1 }
 0x3d6   : > { %3565 = vmatpush3.bf16.msra.mxu0 %v4625_v25 }
 0x3d7   : > { %3566 = vmatprep.subr.bf16.mxu0 %v4366_v1 }
 0x3da   : > { %3568 = vmatpush3.bf16.msra.mxu0 %v4632_v29 }
 0x3db   : > { %3569 = vmatprep.subr.bf16.mxu0 %v4366_v1 }
 0x3de   : > { %3571 = vmatpush3.bf16.msra.mxu0 %v4639_v33 }
 0x3df   : > { %3572 = vmatprep.subr.bf16.mxu0 %v4366_v1 }
 0x3e2   : > { %3574 = vmatpush3.bf16.msra.mxu0 %v4646_v37 }
 0x3e3   : > { %3575 = vmatprep.subr.bf16.mxu0 %v4366_v1 }
 0x3e6   : > { %3577 = vmatpush3.bf16.msra.mxu0 %v4653_v41 }
 0x3e7   : > { %3578 = vmatprep.subr.bf16.mxu0 %v4366_v1 }
 0x3ea   : > { %3580 = vmatpush3.bf16.msra.mxu0 %v4660_v45 }
 0x3eb   : > { %3581 = vmatprep.subr.bf16.mxu0 %v4366_v1 }
 0x4a0   : > { %v781_v12 = vpop.f32.mrb[4].mxu0 }
 0x4a1   : > { %v3927_v13 = vadd.f32 %v781_v12, %v4725_v23  ;;  %v2942_v15 = vpop.f32.mrb[5].mxu0 }
 0x4a3   : > { %v2507_v16 = vmul.f32 -1.442695, %v3927_v13 }
 0x4a5   : > { %4049 = vpow2.f32 %v2507_v16 }
 0x4af   : > { %v4050_v18 = vpop.eup %4049 }
 0x4b0   : > { %v789_v20 = vadd.f32 1.0, %v4050_v18 }
 0x4b2   : > { %4051 = vrcp.f32 %v789_v20 }
 0x4bc   : > { %v4052_v22 = vpop.eup %4051 }
 0x4bd   : > { %v792_v26 = vmul.f32 %v4052_v22, %v4730_v36 }
 0x4bf   : > { %v793_v27 = vadd.f32 %v792_v26, %v4733_v39 }
 0x4c1   : > { %798 = vrot.lane.b32.xlu1 %v793_v27, %s4371_s11  ;;  %794 = vrot.lane.b32.xlu0 %v793_v27, %s4370_s29  ;;  %v800_v31 = vmul.f32 %v793_v27, %v708_v6 }
 0x4c5   : > { %796 = vrot.lane.b32.xlu0 %v793_v27, %s4369_s26 }
 0x533   : > { %v799_v28 = vpop.permute.xlu1 %798  ;;  %v795_v30 = vpop.permute.xlu0 %794 }
 0x534   : > { %v801_v32 = vmul.f32 %v799_v28, %v795_v30 }
 0x536   : > { %v802_v34 = vadd.f32 %v801_v32, %v800_v31 }
 0x537   : > { %v797_v38 = vpop.permute.xlu0 %796 }
 0x538   : > { %4053 = vtanh.f32 %v802_v34 }
 0x542   : > { %v4054_v35 = vpop.eup %4053 }
 0x543   : > { %v4794_v40 = vmul.f32 %v4054_v35, %v797_v38 }
 0x545   : > { %2976 = vmatmul.mubr.f32.vlgmr.msra.gmra.mrb[6].mxu0 %v4794_v40 }
 0x546   : > { %3583 = vmatpush3.bf16.msra.mxu0 %v4611_v17  ;;  %3010 = vmatprep.mubr.msk.f32.mxu0 %vm4367_vm0, %v4365_v0 }
 0x547   : > { %3584 = vmatprep.subr.bf16.mxu0 %v4366_v1 }
 0x54a   : > { %3586 = vmatpush3.bf16.msra.mxu0 %v4618_v21 }
 0x54b   : > { %3587 = vmatprep.subr.bf16.mxu0 %v4366_v1 }
 0x54e   : > { %3589 = vmatpush3.bf16.msra.mxu0 %v4625_v25 }
 0x54f   : > { %3590 = vmatprep.subr.bf16.mxu0 %v4366_v1 }
 0x552   : > { %3592 = vmatpush3.bf16.msra.mxu0 %v4632_v29 }
 0x553   : > { %3593 = vmatprep.subr.bf16.mxu0 %v4366_v1 }
 0x556   : > { %3595 = vmatpush3.bf16.msra.mxu0 %v4639_v33 }
 0x557   : > { %3596 = vmatprep.subr.bf16.mxu0 %v4366_v1 }
 0x55a   : > { %3598 = vmatpush3.bf16.msra.mxu0 %v4646_v37 }
 0x55b   : > { %3599 = vmatprep.subr.bf16.mxu0 %v4366_v1 }
 0x55e   : > { %3601 = vmatpush3.bf16.msra.mxu0 %v4653_v41 }
 0x55f   : > { %3602 = vmatprep.subr.bf16.mxu0 %v4366_v1 }
 0x562   : > { %3604 = vmatpush3.bf16.msra.mxu0 %v4660_v45 }
 0x563   : > { %3605 = vmatprep.subr.bf16.mxu0 %v4366_v1 }
 0x618   : > { %v875_v42 = vpop.f32.mrb[6].mxu0 }
 0x619   : > { %v3928_v43 = vadd.f32 %v875_v42, %v4725_v23  ;;  %v2977_v44 = vpop.f32.mrb[7].mxu0 }
 0x61b   : > { %v2508_v46 = vmul.f32 -1.442695, %v3928_v43 }
 0x61d   : > { %4055 = vpow2.f32 %v2508_v46 }
 0x627   : > { %v4056_v47 = vpop.eup %4055 }
 0x628   : > { %v883_v48 = vadd.f32 1.0, %v4056_v47 }
 0x62a   : > { %4057 = vrcp.f32 %v883_v48 }
 0x634   : > { %v4058_v49 = vpop.eup %4057 }
 0x635   : > { %v886_v50 = vmul.f32 %v4058_v49, %v4730_v36 }
 0x637   : > { %v887_v52 = vadd.f32 %v886_v50, %v4733_v39 }
 0x639   : > { %892 = vrot.lane.b32.xlu0 %v887_v52, %s4371_s11  ;;  %888 = vrot.lane.b32.xlu1 %v887_v52, %s4370_s29  ;;  %v894_v55 = vmul.f32 %v887_v52, %v802_v34 }
 0x63d   : > { %890 = vrot.lane.b32.xlu1 %v887_v52, %s4369_s26 }
 0x6ab   : > { %v893_v53 = vpop.permute.xlu0 %892  ;;  %v889_v54 = vpop.permute.xlu1 %888 }
 0x6ac   : > { %v895_v56 = vmul.f32 %v893_v53, %v889_v54 }
 0x6ae   : > { %v896_v57 = vadd.f32 %v895_v56, %v894_v55 }
 0x6af   : > { %v891_v59 = vpop.permute.xlu1 %890 }
 0x6b0   : > { %4059 = vtanh.f32 %v896_v57 }
 0x6ba   : > { %v4060_v58 = vpop.eup %4059 }
 0x6bb   : > { %v4821_v60 = vmul.f32 %v4060_v58, %v891_v59 }
 0x6bd   : > { %3011 = vmatmul.mubr.f32.vlgmr.msra.gmra.mrb[8].mxu0 %v4821_v60 }
 0x6be   : > { %3607 = vmatpush3.bf16.msra.mxu0 %v4611_v17  ;;  %3045 = vmatprep.mubr.msk.f32.mxu0 %vm4367_vm0, %v4365_v0 }
 0x6bf   : > { %3608 = vmatprep.subr.bf16.mxu0 %v4366_v1 }
 0x6c2   : > { %3610 = vmatpush3.bf16.msra.mxu0 %v4618_v21 }
 0x6c3   : > { %3611 = vmatprep.subr.bf16.mxu0 %v4366_v1 }
 0x6c6   : > { %3613 = vmatpush3.bf16.msra.mxu0 %v4625_v25 }
 0x6c7   : > { %3614 = vmatprep.subr.bf16.mxu0 %v4366_v1 }
 0x6ca   : > { %3616 = vmatpush3.bf16.msra.mxu0 %v4632_v29 }
 0x6cb   : > { %3617 = vmatprep.subr.bf16.mxu0 %v4366_v1 }
 0x6ce   : > { %3619 = vmatpush3.bf16.msra.mxu0 %v4639_v33 }
 0x6cf   : > { %3620 = vmatprep.subr.bf16.mxu0 %v4366_v1 }
 0x6d2   : > { %3622 = vmatpush3.bf16.msra.mxu0 %v4646_v37 }
 0x6d3   : > { %3623 = vmatprep.subr.bf16.mxu0 %v4366_v1 }
 0x6d6   : > { %3625 = vmatpush3.bf16.msra.mxu0 %v4653_v41 }
 0x6d7   : > { %3626 = vmatprep.subr.bf16.mxu0 %v4366_v1 }
 0x6da   : > { %3628 = vmatpush3.bf16.msra.mxu0 %v4660_v45 }
 0x6db   : > { %3629 = vmatprep.subr.bf16.mxu0 %v4366_v1 }
 0x790   : > { %v969_v62 = vpop.f32.mrb[8].mxu0 }
 0x791   : > { %v3929_v63 = vadd.f32 %v969_v62, %v4725_v23  ;;  %v3012_v3 = vpop.f32.mrb[9].mxu0 }
 0x793   : > { %v2509_v4 = vmul.f32 -1.442695, %v3929_v63 }
 0x795   : > { %4061 = vpow2.f32 %v2509_v4 }
 0x79f   : > { %v4062_v6 = vpop.eup %4061 }
 0x7a0   : > { %v977_v7 = vadd.f32 1.0, %v4062_v6  ;;  %v1277_v6 = vld [vmem:[#allocation10 + $0x80] sm:$0xff] }
 0x7a2   : > { %4063 = vrcp.f32 %v977_v7  ;;  %v1278_v7 = vld [vmem:[#allocation10 + $0x88] sm:$0xff] }
 0x7ac   : > { %v4064_v9 = vpop.eup %4063 }
 0x7ad   : > { %v980_v12 = vmul.f32 %v4064_v9, %v4730_v36  ;;  %v1279_v9 = vld [vmem:[#allocation10 + $0x90] sm:$0xff] }
 0x7af   : > { %v981_v13 = vadd.f32 %v980_v12, %v4733_v39  ;;  %v4904_v12 = vpack.c.bf16 %v1278_v7, %v1277_v6 }
 0x7b1   : > { %986 = vrot.lane.b32.xlu1 %v981_v13, %s4371_s11  ;;  %982 = vrot.lane.b32.xlu0 %v981_v13, %s4370_s29  ;;  %v988_v18 = vmul.f32 %v981_v13, %v896_v57 }
 0x7b2   : > { %3679 = vmatpush3.bf16.msra.mxu1 %v4904_v12 }
 0x7b3   : > { %3680 = vmatprep.subr.bf16.mxu1 %v4366_v1 }
 0x7b5   : > { %984 = vrot.lane.b32.xlu0 %v981_v13, %s4369_s26  ;;  %v1280_v13 = vld [vmem:[#allocation10 + $0x98] sm:$0xff] }
 0x823   : > { %v987_v15 = vpop.permute.xlu1 %986  ;;  %v983_v16 = vpop.permute.xlu0 %982 }
 0x824   : > { %v989_v20 = vmul.f32 %v987_v15, %v983_v16  ;;  %v4907_v15 = vpack.c.bf16 %v1280_v13, %v1279_v9  ;;  %v1281_v16 = vld [vmem:[#allocation10 + $0xa0] sm:$0xff] }
 0x826   : > { %v990_v22 = vadd.f32 %v989_v20, %v988_v18  ;;  %v1282_v18 = vld [vmem:[#allocation10 + $0xa8] sm:$0xff]  ;;  %3682 = vmatpush3.bf16.msra.mxu1 %v4907_v15 }
 0x827   : > { %v985_v27 = vpop.permute.xlu0 %984  ;;  %v4911_v20 = vpack.c.bf16 %v1282_v18, %v1281_v16  ;;  %3683 = vmatprep.subr.bf16.mxu1 %v4366_v1 }
 0x828   : > { %4065 = vtanh.f32 %v990_v22 }
 0x82a   : > { %3685 = vmatpush3.bf16.msra.mxu1 %v4911_v20 }
 0x82b   : > { %3686 = vmatprep.subr.bf16.mxu1 %v4366_v1 }
 0x832   : > { %v4066_v26 = vpop.eup %4065 }
 0x833   : > { %v4848_v28 = vmul.f32 %v4066_v26, %v985_v27  ;;  %v1284_v26 = vld [vmem:[#allocation10 + $0xb8] sm:$0xff] }
 0x835   : > { %3046 = vmatmul.mubr.f32.vlgmr.msra.gmra.mrb[10].mxu0 %v4848_v28 }
 0x836   : > { %3631 = vmatpush3.bf16.msra.mxu0 %v4611_v17  ;;  %3080 = vmatprep.mubr.msk.f32.mxu0 %vm4367_vm0, %v4365_v0 }
 0x837   : > { %3632 = vmatprep.subr.bf16.mxu0 %v4366_v1 }
 0x83a   : > { %3634 = vmatpush3.bf16.msra.mxu0 %v4618_v21 }
 0x83b   : > { %3635 = vmatprep.subr.bf16.mxu0 %v4366_v1 }
 0x83e   : > { %3637 = vmatpush3.bf16.msra.mxu0 %v4625_v25 }
 0x83f   : > { %3638 = vmatprep.subr.bf16.mxu0 %v4366_v1 }
 0x842   : > { %3640 = vmatpush3.bf16.msra.mxu0 %v4632_v29 }
 0x843   : > { %3641 = vmatprep.subr.bf16.mxu0 %v4366_v1 }
 0x846   : > { %3643 = vmatpush3.bf16.msra.mxu0 %v4639_v33 }
 0x847   : > { %3644 = vmatprep.subr.bf16.mxu0 %v4366_v1 }
 0x84a   : > { %3646 = vmatpush3.bf16.msra.mxu0 %v4646_v37 }
 0x84b   : > { %3647 = vmatprep.subr.bf16.mxu0 %v4366_v1 }
 0x84e   : > { %3649 = vmatpush3.bf16.msra.mxu0 %v4653_v41 }
 0x84f   : > { %3650 = vmatprep.subr.bf16.mxu0 %v4366_v1 }
 0x852   : > { %3652 = vmatpush3.bf16.msra.mxu0 %v4660_v45 }
 0x853   : > { %3653 = vmatprep.subr.bf16.mxu0 %v4366_v1 }
 0x908   : > { %v1063_v30 = vpop.f32.mrb[10].mxu0 }
 0x909   : > { %v3930_v31 = vadd.f32 %v1063_v30, %v4725_v23  ;;  %v3047_v32 = vpop.f32.mrb[11].mxu0 }
 0x90b   : > { %v2510_v34 = vmul.f32 -1.442695, %v3930_v31 }
 0x90d   : > { %4067 = vpow2.f32 %v2510_v34 }
 0x917   : > { %v4068_v35 = vpop.eup %4067 }
 0x918   : > { %v1071_v38 = vadd.f32 1.0, %v4068_v35 }
 0x91a   : > { %4069 = vrcp.f32 %v1071_v38 }
 0x924   : > { %v4070_v42 = vpop.eup %4069 }
 0x925   : > { %v1074_v43 = vmul.f32 %v4070_v42, %v4730_v36  ;;  %v1285_v42 = vld [vmem:[#allocation10 + $0xc0] sm:$0xff] }
 0x927   : > { %v1075_v44 = vadd.f32 %v1074_v43, %v4733_v39  ;;  %v1286_v43 = vld [vmem:[#allocation10 + $0xc8] sm:$0xff] }
 0x929   : > { %1080 = vrot.lane.b32.xlu0 %v1075_v44, %s4371_s11  ;;  %1076 = vrot.lane.b32.xlu1 %v1075_v44, %s4370_s29  ;;  %v1082_v48 = vmul.f32 %v1075_v44, %v990_v22  ;;  %v1283_v22 = vld [vmem:[#allocation10 + $0xb0] sm:$0xff] }
 0x92a   : > { %v4915_v27 = vpack.c.bf16 %v1284_v26, %v1283_v22 }
 0x92c   : > { %3688 = vmatpush3.bf16.msra.mxu1 %v4915_v27 }
 0x92d   : > { %1078 = vrot.lane.b32.xlu1 %v1075_v44, %s4369_s26  ;;  %3689 = vmatprep.subr.bf16.mxu1 %v4366_v1  ;;  %v4921_v44 = vpack.c.bf16 %v1286_v43, %v1285_v42 }
 0x930   : > { %3691 = vmatpush3.bf16.msra.mxu1 %v4921_v44 }
 0x931   : > { %3692 = vmatprep.subr.bf16.mxu1 %v4366_v1 }
 0x99b   : > { %v1081_v46 = vpop.permute.xlu0 %1080  ;;  %v1077_v47 = vpop.permute.xlu1 %1076 }
 0x99c   : > { %v1083_v49 = vmul.f32 %v1081_v46, %v1077_v47  ;;  %v1287_v46 = vld [vmem:[#allocation10 + $0xd0] sm:$0xff]  ;;  %v1288_v47 = vld [vmem:[#allocation10 + $0xd8] sm:$0xff] }
 0x99e   : > { %v1084_v50 = vadd.f32 %v1083_v49, %v1082_v48  ;;  %v4925_v48 = vpack.c.bf16 %v1288_v47, %v1287_v46  ;;  %v1290_v49 = vld [vmem:[#allocation10 + $0xe8] sm:$0xff] }
 0x99f   : > { %v1079_v53 = vpop.permute.xlu1 %1078 }
 0x9a0   : > { %4071 = vtanh.f32 %v1084_v50  ;;  %3694 = vmatpush3.bf16.msra.mxu1 %v4925_v48 }
 0x9a1   : > { %3695 = vmatprep.subr.bf16.mxu1 %v4366_v1 }
 0x9aa   : > { %v4072_v52 = vpop.eup %4071 }
 0x9ab   : > { %v4875_v54 = vmul.f32 %v4072_v52, %v1079_v53 }
 0x9ad   : > { %3081 = vmatmul.mubr.f32.vlgmr.msra.gmra.mrb[12].mxu0 %v4875_v54 }
 0x9ae   : > { %3655 = vmatpush3.bf16.msra.mxu0 %v4611_v17  ;;  %3115 = vmatprep.mubr.msk.f32.mxu0 %vm4367_vm0, %v4365_v0 }
 0x9af   : > { %3656 = vmatprep.subr.bf16.mxu0 %v4366_v1 }
 0x9b2   : > { %3658 = vmatpush3.bf16.msra.mxu0 %v4618_v21 }
 0x9b3   : > { %3659 = vmatprep.subr.bf16.mxu0 %v4366_v1 }
 0x9b6   : > { %3661 = vmatpush3.bf16.msra.mxu0 %v4625_v25 }
 0x9b7   : > { %3662 = vmatprep.subr.bf16.mxu0 %v4366_v1 }
 0x9ba   : > { %3664 = vmatpush3.bf16.msra.mxu0 %v4632_v29 }
 0x9bb   : > { %3665 = vmatprep.subr.bf16.mxu0 %v4366_v1 }
 0x9be   : > { %3667 = vmatpush3.bf16.msra.mxu0 %v4639_v33 }
 0x9bf   : > { %3668 = vmatprep.subr.bf16.mxu0 %v4366_v1 }
 0x9c2   : > { %3670 = vmatpush3.bf16.msra.mxu0 %v4646_v37 }
 0x9c3   : > { %3671 = vmatprep.subr.bf16.mxu0 %v4366_v1 }
 0x9c6   : > { %3673 = vmatpush3.bf16.msra.mxu0 %v4653_v41 }
 0x9c7   : > { %3674 = vmatprep.subr.bf16.mxu0 %v4366_v1 }
 0x9ca   : > { %3676 = vmatpush3.bf16.msra.mxu0 %v4660_v45 }
 0xa80   : > { %v1157_v17 = vpop.f32.mrb[12].mxu0 }
 0xa81   : > { %v3931_v21 = vadd.f32 %v1157_v17, %v4725_v23  ;;  %v3082_v25 = vpop.f32.mrb[13].mxu0 }
 0xa82   : > { %v1292_v25 = vld [vmem:[#allocation10 + $0xf8] sm:$0xff] }
 0xa83   : > { %v2511_v29 = vmul.f32 -1.442695, %v3931_v21  ;;  %v1291_v21 = vld [vmem:[#allocation10 + $0xf0] sm:$0xff] }
 0xa85   : > { %4073 = vpow2.f32 %v2511_v29  ;;  %v4935_v29 = vpack.c.bf16 %v1292_v25, %v1291_v21 }
 0xa8f   : > { %v4074_v55 = vpop.eup %4073 }
 0xa90   : > { %v1165_v33 = vadd.f32 1.0, %v4074_v55 }
 0xa92   : > { %4075 = vrcp.f32 %v1165_v33 }
 0xa9c   : > { %v4076_v56 = vpop.eup %4075 }
 0xa9d   : > { %v1168_v37 = vmul.f32 %v4076_v56, %v4730_v36 }
 0xa9f   : > { %v1169_v57 = vadd.f32 %v1168_v37, %v4733_v39 }
 0xaa1   : > { %1174 = vrot.lane.b32.xlu1 %v1169_v57, %s4371_s11  ;;  %1170 = vrot.lane.b32.xlu0 %v1169_v57, %s4370_s29  ;;  %v1176_v58 = vmul.f32 %v1169_v57, %v1084_v50 }
 0xaa5   : > { %1172 = vrot.lane.b32.xlu0 %v1169_v57, %s4369_s26 }
 0xb13   : > { %v1175_v41 = vpop.permute.xlu1 %1174  ;;  %v1171_v45 = vpop.permute.xlu0 %1170 }
 0xb14   : > { %v1177_v59 = vmul.f32 %v1175_v41, %v1171_v45 }
 0xb16   : > { %v1178_v62 = vadd.f32 %v1177_v59, %v1176_v58 }
 0xb17   : > { %v1173_v3 = vpop.permute.xlu0 %1172 }
 0xb18   : > { %4077 = vtanh.f32 %v1178_v62 }
 0xb22   : > { %v4078_v63 = vpop.eup %4077 }
 0xb23   : > { %v4901_v4 = vmul.f32 %v4078_v63, %v1173_v3 }
 0xb25   : > { %3116 = vmatmul.mubr.f32.vlgmr.msra.gmra.mrb[14].mxu0 %v4901_v4 }
 0xbf8   : > { %v1251_v30 = vpop.f32.mrb[14].mxu0 }
 0xbf9   : > { %v3932_v31 = vadd.f32 %v1251_v30, %v4725_v23  ;;  %v3117_v32 = vpop.f32.mrb[15].mxu0  ;;  %v1289_v23 = vld [vmem:[#allocation10 + $0xe0] sm:$0xff] }
 0xbfa   : > { %v4929_v52 = vpack.c.bf16 %v1290_v49, %v1289_v23 }
 0xbfb   : > { %v2512_v34 = vmul.f32 -1.442695, %v3932_v31 }
 0xbfc   : > { %3697 = vmatpush3.bf16.msra.mxu1 %v4929_v52 }
 0xbfd   : > { %4079 = vpow2.f32 %v2512_v34  ;;  %3698 = vmatprep.subr.bf16.mxu1 %v4366_v1 }
 0xc00   : > { %3700 = vmatpush3.bf16.msra.mxu1 %v4935_v29 }
 0xc01   : > { %3701 = vmatprep.subr.bf16.mxu1 %v4366_v1 }
 0xc07   : > { %v4080_v35 = vpop.eup %4079 }
 0xc08   : > { %v1259_v38 = vadd.f32 1.0, %v4080_v35 }
 0xc0a   : > { %4081 = vrcp.f32 %v1259_v38 }
 0xc14   : > { %v4082_v50 = vpop.eup %4081 }
 0xc15   : > { %v1262_v53 = vmul.f32 %v4082_v50, %v4730_v36 }
 0xc17   : > { %v1263_v17 = vadd.f32 %v1262_v53, %v4733_v39 }
 0xc19   : > { %1268 = vrot.lane.b32.xlu0 %v1263_v17, %s4371_s11  ;;  %1264 = vrot.lane.b32.xlu1 %v1263_v17, %s4370_s29  ;;  %v1270_v56 = vmul.f32 %v1263_v17, %v1178_v62 }
 0xc1d   : > { %1266 = vrot.lane.b32.xlu1 %v1263_v17, %s4369_s26 }
 0xc8b   : > { %v1269_v55 = vpop.permute.xlu0 %1268  ;;  %v1265_v33 = vpop.permute.xlu1 %1264 }
 0xc8c   : > { %v1271_v37 = vmul.f32 %v1269_v55, %v1265_v33 }
 0xc8e   : > { %v1272_v57 = vadd.f32 %v1271_v37, %v1270_v56 }
 0xc8f   : > { %v1267_v45 = vpop.permute.xlu1 %1266 }
 0xc90   : > { %4083 = vtanh.f32 %v1272_v57 }
 0xc9a   : > { %v4084_v41 = vpop.eup %4083 }
 0xc9b   : > { %v4942_v58 = vmul.f32 %v4084_v41, %v1267_v45 }
 0xc9d   : > { %3151 = vmatmul.mubr.f32.vlgmr.msra.gmra.mrb[0].mxu1 %v4942_v58 }
 0xc9e   : > { %3703 = vmatpush3.bf16.msra.mxu1 %v4904_v12  ;;  %3185 = vmatprep.mubr.msk.f32.mxu1 %vm4367_vm0, %v4365_v0 }
 0xc9f   : > { %3704 = vmatprep.subr.bf16.mxu1 %v4366_v1 }
 0xca2   : > { %3706 = vmatpush3.bf16.msra.mxu1 %v4907_v15 }
 0xca3   : > { %3707 = vmatprep.subr.bf16.mxu1 %v4366_v1 }
 0xca6   : > { %3709 = vmatpush3.bf16.msra.mxu1 %v4911_v20 }
 0xca7   : > { %3710 = vmatprep.subr.bf16.mxu1 %v4366_v1 }
 0xcaa   : > { %3712 = vmatpush3.bf16.msra.mxu1 %v4915_v27 }
 0xcab   : > { %3713 = vmatprep.subr.bf16.mxu1 %v4366_v1 }
 0xcae   : > { %3715 = vmatpush3.bf16.msra.mxu1 %v4921_v44 }
 0xcaf   : > { %3716 = vmatprep.subr.bf16.mxu1 %v4366_v1 }
 0xcb2   : > { %3718 = vmatpush3.bf16.msra.mxu1 %v4925_v48 }
 0xcb3   : > { %3719 = vmatprep.subr.bf16.mxu1 %v4366_v1 }
 0xcb6   : > { %3721 = vmatpush3.bf16.msra.mxu1 %v4929_v52 }
 0xcb7   : > { %3722 = vmatprep.subr.bf16.mxu1 %v4366_v1 }
 0xcba   : > { %3724 = vmatpush3.bf16.msra.mxu1 %v4935_v29 }
 0xcbb   : > { %3725 = vmatprep.subr.bf16.mxu1 %v4366_v1 }
 0xd70   : > { %v1360_v59 = vpop.f32.mrb[0].mxu1 }
 0xd71   : > { %v1364_v62 = vadd.f32 %v1360_v59, %v4711_v61  ;;  %v3152_v63 = vpop.f32.mrb[1].mxu1 }
 0xd73   : > { %v2513_v3 = vmul.f32 -1.442695, %v1364_v62 }
 0xd75   : > { %4085 = vpow2.f32 %v2513_v3 }
 0xd7f   : > { %v4086_v6 = vpop.eup %4085 }
 0xd80   : > { %v1368_v7 = vadd.f32 1.0, %v4086_v6 }
 0xd82   : > { %4087 = vrcp.f32 %v1368_v7 }
 0xd8c   : > { %v4088_v9 = vpop.eup %4087 }
 0xd8d   : > { %v1371_v13 = vmul.f32 %v4088_v9, %v4730_v36 }
 0xd8f   : > { %v1372_v16 = vadd.f32 %v1371_v13, %v4733_v39 }
 0xd91   : > { %1377 = vrot.lane.b32.xlu1 %v1372_v16, %s4371_s11  ;;  %1373 = vrot.lane.b32.xlu0 %v1372_v16, %s4370_s29  ;;  %v1379_v61 = vmul.f32 %v1372_v16, %v1272_v57 }
 0xd95   : > { %1375 = vrot.lane.b32.xlu0 %v1372_v16, %s4369_s26 }
 0xe03   : > { %v1378_v18 = vpop.permute.xlu1 %1377  ;;  %v1374_v22 = vpop.permute.xlu0 %1373 }
 0xe04   : > { %v1380_v26 = vmul.f32 %v1378_v18, %v1374_v22 }
 0xe06   : > { %v1381_v30 = vadd.f32 %v1380_v26, %v1379_v61 }
 0xe07   : > { %v1376_v32 = vpop.permute.xlu0 %1375 }
 0xe08   : > { %4089 = vtanh.f32 %v1381_v30 }
 0xe12   : > { %v4090_v31 = vpop.eup %4089 }
 0xe13   : > { %v4969_v34 = vmul.f32 %v4090_v31, %v1376_v32 }
 0xe15   : > { %3186 = vmatmul.mubr.f32.vlgmr.msra.gmra.mrb[2].mxu1 %v4969_v34 }
 0xe16   : > { %3727 = vmatpush3.bf16.msra.mxu1 %v4904_v12  ;;  %3220 = vmatprep.mubr.msk.f32.mxu1 %vm4367_vm0, %v4365_v0 }
 0xe17   : > { %3728 = vmatprep.subr.bf16.mxu1 %v4366_v1 }
 0xe1a   : > { %3730 = vmatpush3.bf16.msra.mxu1 %v4907_v15 }
 0xe1b   : > { %3731 = vmatprep.subr.bf16.mxu1 %v4366_v1 }
 0xe1e   : > { %3733 = vmatpush3.bf16.msra.mxu1 %v4911_v20 }
 0xe1f   : > { %3734 = vmatprep.subr.bf16.mxu1 %v4366_v1 }
 0xe22   : > { %3736 = vmatpush3.bf16.msra.mxu1 %v4915_v27 }
 0xe23   : > { %3737 = vmatprep.subr.bf16.mxu1 %v4366_v1 }
 0xe26   : > { %3739 = vmatpush3.bf16.msra.mxu1 %v4921_v44 }
 0xe27   : > { %3740 = vmatprep.subr.bf16.mxu1 %v4366_v1 }
 0xe2a   : > { %3742 = vmatpush3.bf16.msra.mxu1 %v4925_v48 }
 0xe2b   : > { %3743 = vmatprep.subr.bf16.mxu1 %v4366_v1 }
 0xe2e   : > { %3745 = vmatpush3.bf16.msra.mxu1 %v4929_v52 }
 0xe2f   : > { %3746 = vmatprep.subr.bf16.mxu1 %v4366_v1 }
 0xe32   : > { %3748 = vmatpush3.bf16.msra.mxu1 %v4935_v29 }
 0xe33   : > { %3749 = vmatprep.subr.bf16.mxu1 %v4366_v1 }
 0xee8   : > { %v1455_v35 = vpop.f32.mrb[2].mxu1 }
 0xee9   : > { %v1459_v38 = vadd.f32 %v1455_v35, %v4713_v2  ;;  %v3187_v42 = vpop.f32.mrb[3].mxu1 }
 0xeeb   : > { %v2514_v43 = vmul.f32 -1.442695, %v1459_v38 }
 0xeed   : > { %4091 = vpow2.f32 %v2514_v43 }
 0xef7   : > { %v4092_v46 = vpop.eup %4091 }
 0xef8   : > { %v1463_v47 = vadd.f32 1.0, %v4092_v46 }
 0xefa   : > { %4093 = vrcp.f32 %v1463_v47 }
 0xf04   : > { %v4094_v23 = vpop.eup %4093 }
 0xf05   : > { %v1466_v49 = vmul.f32 %v4094_v23, %v4730_v36 }
 0xf07   : > { %v1467_v50 = vadd.f32 %v1466_v49, %v4733_v39 }
 0xf09   : > { %1472 = vrot.lane.b32.xlu0 %v1467_v50, %s4371_s11  ;;  %1468 = vrot.lane.b32.xlu1 %v1467_v50, %s4370_s29  ;;  %v1474_v2 = vmul.f32 %v1467_v50, %v1381_v30 }
 0xf0d   : > { %1470 = vrot.lane.b32.xlu1 %v1467_v50, %s4369_s26 }
 0xf7b   : > { %v1473_v53 = vpop.permute.xlu0 %1472  ;;  %v1469_v17 = vpop.permute.xlu1 %1468 }
 0xf7c   : > { %v1475_v21 = vmul.f32 %v1473_v53, %v1469_v17 }
 0xf7e   : > { %v1476_v25 = vadd.f32 %v1475_v21, %v1474_v2 }
 0xf7f   : > { %v1471_v33 = vpop.permute.xlu1 %1470 }
 0xf80   : > { %4095 = vtanh.f32 %v1476_v25 }
 0xf8a   : > { %v4096_v55 = vpop.eup %4095 }
 0xf8b   : > { %v4996_v56 = vmul.f32 %v4096_v55, %v1471_v33 }
 0xf8d   : > { %3221 = vmatmul.mubr.f32.vlgmr.msra.gmra.mrb[4].mxu1 %v4996_v56 }
 0xf8e   : > { %3751 = vmatpush3.bf16.msra.mxu1 %v4904_v12  ;;  %3255 = vmatprep.mubr.msk.f32.mxu1 %vm4367_vm0, %v4365_v0 }
 0xf8f   : > { %3752 = vmatprep.subr.bf16.mxu1 %v4366_v1 }
 0xf92   : > { %3754 = vmatpush3.bf16.msra.mxu1 %v4907_v15 }
 0xf93   : > { %3755 = vmatprep.subr.bf16.mxu1 %v4366_v1 }
 0xf96   : > { %3757 = vmatpush3.bf16.msra.mxu1 %v4911_v20 }
 0xf97   : > { %3758 = vmatprep.subr.bf16.mxu1 %v4366_v1 }
 0xf9a   : > { %3760 = vmatpush3.bf16.msra.mxu1 %v4915_v27 }
 0xf9b   : > { %3761 = vmatprep.subr.bf16.mxu1 %v4366_v1 }
 0xf9e   : > { %3763 = vmatpush3.bf16.msra.mxu1 %v4921_v44 }
 0xf9f   : > { %3764 = vmatprep.subr.bf16.mxu1 %v4366_v1 }
 0xfa2   : > { %3766 = vmatpush3.bf16.msra.mxu1 %v4925_v48 }
 0xfa3   : > { %3767 = vmatprep.subr.bf16.mxu1 %v4366_v1 }
 0xfa6   : > { %3769 = vmatpush3.bf16.msra.mxu1 %v4929_v52 }
 0xfa7   : > { %3770 = vmatprep.subr.bf16.mxu1 %v4366_v1 }
 0xfaa   : > { %3772 = vmatpush3.bf16.msra.mxu1 %v4935_v29 }
 0xfab   : > { %3773 = vmatprep.subr.bf16.mxu1 %v4366_v1 }
0x1060   : > { %v1550_v37 = vpop.f32.mrb[4].mxu1 }
0x1061   : > { %v1554_v57 = vadd.f32 %v1550_v37, %v4715_v5  ;;  %v3222_v41 = vpop.f32.mrb[5].mxu1 }
0x1063   : > { %v2515_v45 = vmul.f32 -1.442695, %v1554_v57 }
0x1065   : > { %4097 = vpow2.f32 %v2515_v45 }
0x106f   : > { %v4098_v59 = vpop.eup %4097 }
0x1070   : > { %v1558_v62 = vadd.f32 1.0, %v4098_v59 }
0x1072   : > { %4099 = vrcp.f32 %v1558_v62 }
0x107c   : > { %v4100_v63 = vpop.eup %4099 }
0x107d   : > { %v1561_v3 = vmul.f32 %v4100_v63, %v4730_v36 }
0x107f   : > { %v1562_v6 = vadd.f32 %v1561_v3, %v4733_v39 }
0x1081   : > { %1567 = vrot.lane.b32.xlu1 %v1562_v6, %s4371_s11  ;;  %1563 = vrot.lane.b32.xlu0 %v1562_v6, %s4370_s29  ;;  %v1569_v5 = vmul.f32 %v1562_v6, %v1476_v25 }
0x1085   : > { %1565 = vrot.lane.b32.xlu0 %v1562_v6, %s4369_s26 }
0x10f3   : > { %v1568_v7 = vpop.permute.xlu1 %1567  ;;  %v1564_v9 = vpop.permute.xlu0 %1563 }
0x10f4   : > { %v1570_v13 = vmul.f32 %v1568_v7, %v1564_v9 }
0x10f6   : > { %v1571_v16 = vadd.f32 %v1570_v13, %v1569_v5 }
0x10f7   : > { %v1566_v22 = vpop.permute.xlu0 %1565 }
0x10f8   : > { %4101 = vtanh.f32 %v1571_v16 }
0x1102   : > { %v4102_v18 = vpop.eup %4101 }
0x1103   : > { %v5023_v61 = vmul.f32 %v4102_v18, %v1566_v22 }
0x1105   : > { %3256 = vmatmul.mubr.f32.vlgmr.msra.gmra.mrb[6].mxu1 %v5023_v61 }
0x1106   : > { %3775 = vmatpush3.bf16.msra.mxu1 %v4904_v12  ;;  %3290 = vmatprep.mubr.msk.f32.mxu1 %vm4367_vm0, %v4365_v0 }
0x1107   : > { %3776 = vmatprep.subr.bf16.mxu1 %v4366_v1 }
0x110a   : > { %3778 = vmatpush3.bf16.msra.mxu1 %v4907_v15 }
0x110b   : > { %3779 = vmatprep.subr.bf16.mxu1 %v4366_v1 }
0x110e   : > { %3781 = vmatpush3.bf16.msra.mxu1 %v4911_v20 }
0x110f   : > { %3782 = vmatprep.subr.bf16.mxu1 %v4366_v1 }
0x1112   : > { %3784 = vmatpush3.bf16.msra.mxu1 %v4915_v27 }
0x1113   : > { %3785 = vmatprep.subr.bf16.mxu1 %v4366_v1 }
0x1116   : > { %3787 = vmatpush3.bf16.msra.mxu1 %v4921_v44 }
0x1117   : > { %3788 = vmatprep.subr.bf16.mxu1 %v4366_v1 }
0x111a   : > { %3790 = vmatpush3.bf16.msra.mxu1 %v4925_v48 }
0x111b   : > { %3791 = vmatprep.subr.bf16.mxu1 %v4366_v1 }
0x111e   : > { %3793 = vmatpush3.bf16.msra.mxu1 %v4929_v52 }
0x111f   : > { %3794 = vmatprep.subr.bf16.mxu1 %v4366_v1 }
0x1122   : > { %3796 = vmatpush3.bf16.msra.mxu1 %v4935_v29 }
0x1123   : > { %3797 = vmatprep.subr.bf16.mxu1 %v4366_v1 }
0x11d8   : > { %v1645_v26 = vpop.f32.mrb[6].mxu1 }
0x11d9   : > { %v1649_v30 = vadd.f32 %v1645_v26, %v4717_v8  ;;  %v3257_v31 = vpop.f32.mrb[7].mxu1 }
0x11db   : > { %v2516_v32 = vmul.f32 -1.442695, %v1649_v30 }
0x11dd   : > { %4103 = vpow2.f32 %v2516_v32 }
0x11e7   : > { %v4104_v35 = vpop.eup %4103 }
0x11e8   : > { %v1653_v38 = vadd.f32 1.0, %v4104_v35 }
0x11ea   : > { %4105 = vrcp.f32 %v1653_v38 }
0x11f4   : > { %v4106_v42 = vpop.eup %4105 }
0x11f5   : > { %v1656_v43 = vmul.f32 %v4106_v42, %v4730_v36 }
0x11f7   : > { %v1657_v46 = vadd.f32 %v1656_v43, %v4733_v39 }
0x11f9   : > { %1662 = vrot.lane.b32.xlu0 %v1657_v46, %s4371_s11  ;;  %1658 = vrot.lane.b32.xlu1 %v1657_v46, %s4370_s29  ;;  %v1664_v8 = vmul.f32 %v1657_v46, %v1571_v16 }
0x11fd   : > { %1660 = vrot.lane.b32.xlu1 %v1657_v46, %s4369_s26 }
0x126b   : > { %v1663_v47 = vpop.permute.xlu0 %1662  ;;  %v1659_v23 = vpop.permute.xlu1 %1658 }
0x126c   : > { %v1665_v49 = vmul.f32 %v1663_v47, %v1659_v23 }
0x126e   : > { %v1666_v50 = vadd.f32 %v1665_v49, %v1664_v8 }
0x126f   : > { %v1661_v17 = vpop.permute.xlu1 %1660 }
0x1270   : > { %4107 = vtanh.f32 %v1666_v50 }
0x127a   : > { %v4108_v53 = vpop.eup %4107 }
0x127b   : > { %v5050_v2 = vmul.f32 %v4108_v53, %v1661_v17 }
0x127d   : > { %3291 = vmatmul.mubr.f32.vlgmr.msra.gmra.mrb[8].mxu1 %v5050_v2 }
0x127e   : > { %3799 = vmatpush3.bf16.msra.mxu1 %v4904_v12  ;;  %3325 = vmatprep.mubr.msk.f32.mxu1 %vm4367_vm0, %v4365_v0 }
0x127f   : > { %3800 = vmatprep.subr.bf16.mxu1 %v4366_v1 }
0x1282   : > { %3802 = vmatpush3.bf16.msra.mxu1 %v4907_v15 }
0x1283   : > { %3803 = vmatprep.subr.bf16.mxu1 %v4366_v1 }
0x1286   : > { %3805 = vmatpush3.bf16.msra.mxu1 %v4911_v20 }
0x1287   : > { %3806 = vmatprep.subr.bf16.mxu1 %v4366_v1 }
0x128a   : > { %3808 = vmatpush3.bf16.msra.mxu1 %v4915_v27 }
0x128b   : > { %3809 = vmatprep.subr.bf16.mxu1 %v4366_v1 }
0x128e   : > { %3811 = vmatpush3.bf16.msra.mxu1 %v4921_v44 }
0x128f   : > { %3812 = vmatprep.subr.bf16.mxu1 %v4366_v1 }
0x1292   : > { %3814 = vmatpush3.bf16.msra.mxu1 %v4925_v48 }
0x1293   : > { %3815 = vmatprep.subr.bf16.mxu1 %v4366_v1 }
0x1296   : > { %3817 = vmatpush3.bf16.msra.mxu1 %v4929_v52 }
0x1297   : > { %3818 = vmatprep.subr.bf16.mxu1 %v4366_v1 }
0x129a   : > { %3820 = vmatpush3.bf16.msra.mxu1 %v4935_v29 }
0x129b   : > { %3821 = vmatprep.subr.bf16.mxu1 %v4366_v1 }
0x1350   : > { %v1740_v21 = vpop.f32.mrb[8].mxu1 }
0x1351   : > { %v1744_v25 = vadd.f32 %v1740_v21, %v4719_v11  ;;  %v3292_v55 = vpop.f32.mrb[9].mxu1 }
0x1353   : > { %v2517_v33 = vmul.f32 -1.442695, %v1744_v25 }
0x1355   : > { %4109 = vpow2.f32 %v2517_v33 }
0x135f   : > { %v4110_v37 = vpop.eup %4109 }
0x1360   : > { %v1748_v57 = vadd.f32 1.0, %v4110_v37  ;;  %v2062_v37 = vld [vmem:[#allocation10 + $0x110] sm:$0xff] }
0x1362   : > { %4111 = vrcp.f32 %v1748_v57  ;;  %v2063_v57 = vld [vmem:[#allocation10 + $0x118] sm:$0xff] }
0x136c   : > { %v4112_v41 = vpop.eup %4111 }
0x136d   : > { %v1751_v45 = vmul.f32 %v4112_v41, %v4730_v36 }
0x136f   : > { %v1752_v59 = vadd.f32 %v1751_v45, %v4733_v39 }
0x1371   : > { %1757 = vrot.lane.b32.xlu1 %v1752_v59, %s4371_s11  ;;  %1753 = vrot.lane.b32.xlu0 %v1752_v59, %s4370_s29  ;;  %v1759_v11 = vmul.f32 %v1752_v59, %v1666_v50 }
0x1375   : > { %1755 = vrot.lane.b32.xlu0 %v1752_v59, %s4369_s26 }
0x13e3   : > { %v1758_v62 = vpop.permute.xlu1 %1757  ;;  %v1754_v63 = vpop.permute.xlu0 %1753 }
0x13e4   : > { %v1760_v3 = vmul.f32 %v1758_v62, %v1754_v63  ;;  %v3873_v62 = vpack.c.bf16 %v2063_v57, %v2062_v37  ;;  %v5135_v63 = vmul.f32 %v4969_v34, %v4740_v51  ;;  %v2070_v51 = vld [vmem:[#allocation10 + $0x150] sm:$0xff]  ;;  %v2071_v34 = vld [vmem:[#allocation10 + $0x158] sm:$0xff] }
0x13e6   : > { %v1761_v6 = vadd.f32 %v1760_v3, %v1759_v11  ;;  %v2064_v11 = vld [vmem:[#allocation10 + $0x120] sm:$0xff]  ;;  %v2065_v3 = vld [vmem:[#allocation10 + $0x128] sm:$0xff] }
0x13e7   : > { %v1756_v9 = vpop.permute.xlu0 %1755 }
0x13e8   : > { %4113 = vtanh.f32 %v1761_v6 }
0x13f2   : > { %v4114_v7 = vpop.eup %4113 }
0x13f3   : > { %v5077_v5 = vmul.f32 %v4114_v7, %v1756_v9  ;;  %v2066_v7 = vld [vmem:[#allocation10 + $0x130] sm:$0xff]  ;;  %v2067_v9 = vld [vmem:[#allocation10 + $0x138] sm:$0xff] }
0x13f5   : > { %3326 = vmatmul.mubr.f32.vlgmr.msra.gmra.mrb[10].mxu1 %v5077_v5 }
0x13f6   : > { %3823 = vmatpush3.bf16.msra.mxu1 %v4904_v12  ;;  %3360 = vmatprep.mubr.msk.f32.mxu1 %vm4367_vm0, %v4365_v0 }
0x13f7   : > { %3824 = vmatprep.subr.bf16.mxu1 %v4366_v1 }
0x13fa   : > { %3826 = vmatpush3.bf16.msra.mxu1 %v4907_v15 }
0x13fb   : > { %3827 = vmatprep.subr.bf16.mxu1 %v4366_v1 }
0x13fe   : > { %3829 = vmatpush3.bf16.msra.mxu1 %v4911_v20 }
0x13ff   : > { %3830 = vmatprep.subr.bf16.mxu1 %v4366_v1 }
0x1402   : > { %3832 = vmatpush3.bf16.msra.mxu1 %v4915_v27 }
0x1403   : > { %3833 = vmatprep.subr.bf16.mxu1 %v4366_v1 }
0x1406   : > { %3835 = vmatpush3.bf16.msra.mxu1 %v4921_v44 }
0x1407   : > { %3836 = vmatprep.subr.bf16.mxu1 %v4366_v1 }
0x140a   : > { %3838 = vmatpush3.bf16.msra.mxu1 %v4925_v48 }
0x140b   : > { %3839 = vmatprep.subr.bf16.mxu1 %v4366_v1 }
0x140e   : > { %3841 = vmatpush3.bf16.msra.mxu1 %v4929_v52 }
0x140f   : > { %3842 = vmatprep.subr.bf16.mxu1 %v4366_v1 }
0x1412   : > { %3844 = vmatpush3.bf16.msra.mxu1 %v4935_v29 }
0x1413   : > { %3845 = vmatprep.subr.bf16.mxu1 %v4366_v1 }
0x14c8   : > { %v1835_v13 = vpop.f32.mrb[10].mxu1 }
0x14c9   : > { %v1839_v16 = vadd.f32 %v1835_v13, %v4721_v14  ;;  %v3327_v18 = vpop.f32.mrb[11].mxu1  ;;  %v3881_v13 = vpack.c.bf16 %v2067_v9, %v2066_v7 }
0x14ca   : > { %v2069_v18 = vld [vmem:[#allocation10 + $0x148] sm:$0xff] }
0x14cb   : > { %v2518_v22 = vmul.f32 -1.442695, %v1839_v16  ;;  %v2068_v16 = vld [vmem:[#allocation10 + $0x140] sm:$0xff] }
0x14cd   : > { %4115 = vpow2.f32 %v2518_v22  ;;  %v3885_v22 = vpack.c.bf16 %v2069_v18, %v2068_v16 }
0x14d7   : > { %v4116_v26 = vpop.eup %4115 }
0x14d8   : > { %v1843_v30 = vadd.f32 1.0, %v4116_v26  ;;  %v3889_v26 = vpack.c.bf16 %v2071_v34, %v2070_v51 }
0x14da   : > { %4117 = vrcp.f32 %v1843_v30  ;;  %v2072_v30 = vld [vmem:[#allocation10 + $0x160] sm:$0xff] }
0x14e4   : > { %v4118_v31 = vpop.eup %4117 }
0x14e5   : > { %v1846_v32 = vmul.f32 %v4118_v31, %v4730_v36  ;;  %v2073_v31 = vld [vmem:[#allocation10 + $0x168] sm:$0xff] }
0x14e7   : > { %v1847_v35 = vadd.f32 %v1846_v32, %v4733_v39  ;;  %v3893_v32 = vpack.c.bf16 %v2073_v31, %v2072_v30 }
0x14e9   : > { %1852 = vrot.lane.b32.xlu0 %v1847_v35, %s4371_s11  ;;  %1848 = vrot.lane.b32.xlu1 %v1847_v35, %s4370_s29  ;;  %v1854_v14 = vmul.f32 %v1847_v35, %v1761_v6  ;;  %v3877_v6 = vpack.c.bf16 %v2065_v3, %v2064_v11 }
0x14ed   : > { %1850 = vrot.lane.b32.xlu1 %v1847_v35, %s4369_s26  ;;  %v2074_v35 = vld [vmem:[#allocation10 + $0x170] sm:$0xff] }
0x155b   : > { %v1853_v38 = vpop.permute.xlu0 %1852  ;;  %v1849_v42 = vpop.permute.xlu1 %1848 }
0x155c   : > { %v1855_v43 = vmul.f32 %v1853_v38, %v1849_v42  ;;  %v2075_v38 = vld [vmem:[#allocation10 + $0x178] sm:$0xff] }
0x155d   : > { %v3897_v42 = vpack.c.bf16 %v2075_v38, %v2074_v35  ;;  %v2275_v38 = vld [vmem:[#allocation10 + $0x180] sm:$0xff] }
0x155e   : > { %v1856_v46 = vadd.f32 %v1855_v43, %v1854_v14  ;;  %v5140_v14 = vmul.f32 %v4996_v56, %v4767_v10  ;;  %v5145_v43 = vmul.f32 %v5023_v61, %v4794_v40 }
0x155f   : > { %v1851_v23 = vpop.permute.xlu1 %1850 }
0x1560   : > { %4119 = vtanh.f32 %v1856_v46 }
0x156a   : > { %v4120_v47 = vpop.eup %4119 }
0x156b   : > { %v5104_v8 = vmul.f32 %v4120_v47, %v1851_v23  ;;  %v5155_v47 = vmul.f32 %v5077_v5, %v4848_v28 }
0x156d   : > { %3361 = vmatmul.mubr.f32.vlgmr.msra.gmra.mrb[12].mxu1 %v5104_v8  ;;  %v5161_v10 = vmul.f32 %v5104_v8, %v4875_v54 }
0x156e   : > { %3847 = vmatpush3.bf16.msra.mxu1 %v4904_v12  ;;  %3395 = vmatprep.mubr.msk.f32.mxu1 %vm4367_vm0, %v4365_v0 }
0x156f   : > { %3848 = vmatprep.subr.bf16.mxu1 %v4366_v1 }
0x1572   : > { %3850 = vmatpush3.bf16.msra.mxu1 %v4907_v15 }
0x1573   : > { %3851 = vmatprep.subr.bf16.mxu1 %v4366_v1 }
0x1576   : > { %3853 = vmatpush3.bf16.msra.mxu1 %v4911_v20 }
0x1577   : > { %3854 = vmatprep.subr.bf16.mxu1 %v4366_v1 }
0x157a   : > { %3856 = vmatpush3.bf16.msra.mxu1 %v4915_v27 }
0x157b   : > { %3857 = vmatprep.subr.bf16.mxu1 %v4366_v1 }
0x157e   : > { %3859 = vmatpush3.bf16.msra.mxu1 %v4921_v44 }
0x157f   : > { %3860 = vmatprep.subr.bf16.mxu1 %v4366_v1 }
0x1582   : > { %3862 = vmatpush3.bf16.msra.mxu1 %v4925_v48 }
0x1583   : > { %3863 = vmatprep.subr.bf16.mxu1 %v4366_v1 }
0x1586   : > { %3865 = vmatpush3.bf16.msra.mxu1 %v4929_v52  ;;  %v2060_v52 = vld [vmem:[#allocation10 + $0x100] sm:$0xff] }
0x1587   : > { %3866 = vmatprep.subr.bf16.mxu1 %v4366_v1 }
0x158a   : > { %3868 = vmatpush3.bf16.msra.mxu1 %v4935_v29  ;;  %v2061_v29 = vld [vmem:[#allocation10 + $0x108] sm:$0xff] }
0x158b   : > { %v3869_v17 = vpack.c.bf16 %v2061_v29, %v2060_v52  ;;  %v259_v29 = vld [vmem:[#allocation11 + $0x2] ss:$0 sm:$0xff] }
0x158d   : > { %3870 = vmatprep.subr.bf16.mxu1 %v3869_v17 }
0x1640   : > { %v1930_v12 = vpop.f32.mrb[12].mxu1 }
0x1641   : > { %v1934_v15 = vadd.f32 %v1930_v12, %v4723_v19  ;;  %v3362_v20 = vpop.f32.mrb[13].mxu1 }
0x1643   : > { %v2519_v27 = vmul.f32 -1.442695, %v1934_v15 }
0x1645   : > { %4121 = vpow2.f32 %v2519_v27 }
0x164f   : > { %v4122_v49 = vpop.eup %4121 }
0x1650   : > { %v1938_v44 = vadd.f32 1.0, %v4122_v49  ;;  %v258_v49 = vld [vmem:[#allocation11 + $0x1] ss:$0 sm:$0xff] }
0x1652   : > { %4123 = vrcp.f32 %v1938_v44 }
0x165c   : > { %v4124_v50 = vpop.eup %4123 }
0x165d   : > { %v1941_v48 = vmul.f32 %v4124_v50, %v4730_v36 }
0x165f   : > { %v1942_v53 = vadd.f32 %v1941_v48, %v4733_v39 }
0x1661   : > { %1947 = vrot.lane.b32.xlu1 %v1942_v53, %s4371_s11  ;;  %1943 = vrot.lane.b32.xlu0 %v1942_v53, %s4370_s29  ;;  %v1949_v25 = vmul.f32 %v1942_v53, %v1856_v46  ;;  %v5151_v46 = vmul.f32 %v5050_v2, %v4821_v60 }
0x1665   : > { %1945 = vrot.lane.b32.xlu0 %v1942_v53, %s4369_s26 }
0x16d3   : > { %v1948_v19 = vpop.permute.xlu1 %1947  ;;  %v1944_v21 = vpop.permute.xlu0 %1943 }
0x16d4   : > { %v1950_v55 = vmul.f32 %v1948_v19, %v1944_v21 }
0x16d6   : > { %v5130_v33 = vadd.f32 %v1950_v55, %v1949_v25 }
0x16d7   : > { %v1946_v45 = vpop.permute.xlu0 %1945 }
0x16d8   : > { %4125 = vtanh.f32 %v5130_v33 }
0x16e2   : > { %v4126_v41 = vpop.eup %4125 }
0x16e3   : > { %v1953_v59 = vmul.f32 %v4126_v41, %v1946_v45 }
0x16e5   : > { %3396 = vmatmul.mubr.f32.vlgmr.msra.gmra.mrb[14].mxu1 %v1953_v59  ;;  %v5164_v40 = vmul.f32 %v1953_v59, %v4901_v4 }
0x16e6   : > { %3872 = vmatpush3.bf16.msra.mxu1 %v3869_v17  ;;  %3430 = vmatprep.mubr.f32.mxu1 %v5135_v63 }
0x16e7   : > { %3874 = vmatprep.subr.bf16.mxu1 %v3873_v62 }
0x16ea   : > { %3876 = vmatpush3.bf16.msra.mxu1 %v3873_v62 }
0x16eb   : > { %3878 = vmatprep.subr.bf16.mxu1 %v3877_v6 }
0x16ee   : > { %3880 = vmatpush3.bf16.msra.mxu1 %v3877_v6 }
0x16ef   : > { %3882 = vmatprep.subr.bf16.mxu1 %v3881_v13 }
0x16f2   : > { %3884 = vmatpush3.bf16.msra.mxu1 %v3881_v13 }
0x16f3   : > { %3886 = vmatprep.subr.bf16.mxu1 %v3885_v22 }
0x16f6   : > { %3888 = vmatpush3.bf16.msra.mxu1 %v3885_v22 }
0x16f7   : > { %3890 = vmatprep.subr.bf16.mxu1 %v3889_v26 }
0x16fa   : > { %3892 = vmatpush3.bf16.msra.mxu1 %v3889_v26 }
0x16fb   : > { %3894 = vmatprep.subr.bf16.mxu1 %v3893_v32 }
0x16fe   : > { %3896 = vmatpush3.bf16.msra.mxu1 %v3893_v32 }
0x16ff   : > { %3898 = vmatprep.subr.bf16.mxu1 %v3897_v42 }
0x1702   : > { %3900 = vmatpush3.bf16.msra.mxu1 %v3897_v42 }
0x1703   : > { %3901 = vmatprep.subr.bf16.mxu1 %v4366_v1 }
0x1705   : > { %3431 = vmatmul.mubr.f32.vlgmr.msra.gmra.mrb[16].mxu1 %v5140_v14 }
0x1706   : > { %3433 = vmatprep.mubr.f32.mxu1 %v5145_v43 }
0x1709   : > { %3434 = vmatmul.mubr.f32.gmra.mrb[18].mxu1 %v5151_v46 }
0x170a   : > { %3436 = vmatprep.mubr.f32.mxu1 %v5155_v47 }
0x170d   : > { %3437 = vmatmul.mubr.f32.gmra.mrb[20].mxu1 %v5161_v10 }
0x170e   : > { %3439 = vmatprep.mubr.f32.mxu1 %v5164_v40 }
0x17b8   : > { %v2025_v60 = vpop.f32.mrb[14].mxu1 }
0x17b9   : > { %v2029_v56 = vadd.f32 %v2025_v60, %v4727_v24  ;;  %v3397_v28 = vpop.f32.mrb[15].mxu1  ;;  %v2277_v60 = vld [vmem:[#allocation10 + $0x190] sm:$0xff] }
0x17ba   : > { %v2279_v28 = vld [vmem:[#allocation10 + $0x1a0] sm:$0xff] }
0x17bb   : > { %v2520_v61 = vmul.f32 -1.442695, %v2029_v56 }
0x17bd   : > { %4127 = vpow2.f32 %v2520_v61  ;;  %v2280_v61 = vld [vmem:[#allocation10 + $0x1a8] sm:$0xff] }
0x17c7   : > { %v4128_v2 = vpop.eup %4127 }
0x17c8   : > { %v2033_v5 = vadd.f32 1.0, %v4128_v2  ;;  %v3908_v2 = vpack.c.bf16 %v2280_v61, %v2279_v28 }
0x17ca   : > { %4129 = vrcp.f32 %v2033_v5  ;;  %v2281_v5 = vld [vmem:[#allocation10 + $0x1b0] sm:$0xff] }
0x17d4   : > { %v4130_v23 = vpop.eup %4129 }
0x17d5   : > { %v2036_v54 = vmul.f32 %v4130_v23, %v4730_v36  ;;  %v2282_v23 = vld [vmem:[#allocation10 + $0x1b8] sm:$0xff] }
0x17d7   : > { %v2037_v8 = vadd.f32 %v2036_v54, %v4733_v39  ;;  %v2283_v54 = vld [vmem:[#allocation10 + $0x1c0] sm:$0xff] }
0x17d8   : > { %v3432_v4 = vpop.f32.mrb[16].mxu1 }
0x17d9   : > { %v2142_v12 = vpop.f32.mrb[17].mxu1  ;;  %2042 = vrot.lane.b32.xlu0 %v2037_v8, %s4371_s11  ;;  %2038 = vrot.lane.b32.xlu1 %v2037_v8, %s4370_s29  ;;  %v2148_v48 = vadd.f32 %v3432_v4, %v258_v49  ;;  %v2044_v6 = vmul.f32 %v2037_v8, %v5130_v33  ;;  %v2284_v4 = vld [vmem:[#allocation10 + $0x1c8] sm:$0xff] }
0x17da   : > { %v2143_v44 = vadd.f32 %v2142_v12, %v258_v49  ;;  %v3914_v12 = vpack.c.bf16 %v2284_v4, %v2283_v54 }
0x17dc   : > { %v3435_v15 = vpop.f32.mrb[18].mxu1  ;;  %4131 = vtanh.f32 %v2143_v44 }
0x17dd   : > { %v2152_v20 = vpop.f32.mrb[19].mxu1  ;;  %2040 = vrot.lane.b32.xlu1 %v2037_v8, %s4369_s26  ;;  %v2158_v50 = vadd.f32 %v3435_v15, %v258_v49  ;;  %v3911_v8 = vpack.c.bf16 %v2282_v23, %v2281_v5  ;;  %v2285_v15 = vld [vmem:[#allocation10 + $0x1d0] sm:$0xff] }
0x17de   : > { %v2153_v36 = vadd.f32 %v2152_v20, %v258_v49  ;;  %v2286_v20 = vld [vmem:[#allocation10 + $0x1d8] sm:$0xff] }
0x17df   : > { %4133 = vtanh.f32 %v2158_v50  ;;  %v2289_v50 = vld [vmem:[#allocation10 + $0x1f0] sm:$0xff] }
0x17e0   : > { %v3438_v24 = vpop.f32.mrb[20].mxu1  ;;  %4135 = vtanh.f32 %v2153_v36  ;;  %v2290_v36 = vld [vmem:[#allocation10 + $0x1f8] sm:$0xff] }
0x17e1   : > { %v2162_v27 = vpop.f32.mrb[21].mxu1  ;;  %v2168_v39 = vadd.f32 %v3438_v24, %v258_v49  ;;  %4137 = vtanh.f32 %v2148_v48  ;;  %v3917_v24 = vpack.c.bf16 %v2286_v20, %v2285_v15  ;;  %v3923_v48 = vpack.c.bf16 %v2290_v36, %v2289_v50 }
0x17e2   : > { %v2163_v53 = vadd.f32 %v2162_v27, %v258_v49  ;;  %v2287_v27 = vld [vmem:[#allocation10 + $0x1e0] sm:$0xff] }
0x17e3   : > { %4139 = vtanh.f32 %v2168_v39 }
0x17e4   : > { %4141 = vtanh.f32 %v2163_v53 }
0x17e6   : > { %v4132_v52 = vpop.eup %4131 }
0x17e7   : > { %v2189_v17 = vmul.f32 %v4132_v52, %v259_v29 }
0x17e9   : > { %v4134_v19 = vpop.eup %4133 }
0x17ea   : > { %v2192_v21 = vmul.f32 %v4134_v19, %v259_v29  ;;  %v4136_v25 = vpop.eup %4135 }
0x17eb   : > { %v4138_v55 = vpop.eup %4137  ;;  %v2191_v37 = vmul.f32 %v4136_v25, %v259_v29 }
0x17ec   : > { %v2190_v41 = vmul.f32 %v4138_v55, %v259_v29 }
0x17ed   : > { %v4140_v57 = vpop.eup %4139 }
0x17ee   : > { %v4142_v45 = vpop.eup %4141  ;;  %v2194_v59 = vmul.f32 %v4140_v57, %v259_v29 }
0x17ef   : > { %v2193_v62 = vmul.f32 %v4142_v45, %v259_v29 }
0x17f8   : > { %2197 = vadd.xlane.f32.xlu0 %v2189_v17 }
0x17fc   : > { %2203 = vadd.xlane.f32.xlu0 %v2192_v21 }
0x1800   : > { %2201 = vadd.xlane.f32.xlu0 %v2191_v37 }
0x1801   : > { %2199 = vadd.xlane.f32.xlu1 %v2190_v41 }
0x1804   : > { %2207 = vadd.xlane.f32.xlu0 %v2194_v59 }
0x1805   : > { %2205 = vadd.xlane.f32.xlu1 %v2193_v62 }
0x184b   : > { %v2043_v11 = vpop.permute.xlu0 %2042  ;;  %v2039_v3 = vpop.permute.xlu1 %2038 }
0x184c   : > { %v2045_v7 = vmul.f32 %v2043_v11, %v2039_v3 }
0x184e   : > { %v2046_v9 = vadd.f32 %v2045_v7, %v2044_v6 }
0x184f   : > { %v2041_v16 = vpop.permute.xlu1 %2040 }
0x1850   : > { %4143 = vtanh.f32 %v2046_v9 }
0x185a   : > { %v4144_v13 = vpop.eup %4143 }
0x185b   : > { %v2048_v18 = vmul.f32 %v4144_v13, %v2041_v16 }
0x185d   : > { %v5176_v22 = vmul.f32 %v2048_v18, %v4942_v58  ;;  %v2276_v58 = vld [vmem:[#allocation10 + $0x188] sm:$0xff] }
0x185e   : > { %v3902_v42 = vpack.c.bf16 %v2276_v58, %v2275_v38 }
0x185f   : > { %3440 = vmatmul.mubr.f32.gmra.mrb[22].mxu1 %v5176_v22 }
0x1860   : > { %3474 = vmatprep.mubr.msk.f32.mxu1 %vm4367_vm0, %v4365_v0  ;;  %3903 = vmatpush3.bf16.msra.mxu1 %v3902_v42  ;;  %v2278_v0 = vld [vmem:[#allocation10 + $0x198] sm:$0xff] }
0x1861   : > { %3904 = vmatprep.subr.bf16.mxu1 %v4366_v1  ;;  %v3905_v56 = vpack.c.bf16 %v2278_v0, %v2277_v60 }
0x1864   : > { %3906 = vmatpush3.bf16.msra.mxu1 %v3905_v56 }
0x1865   : > { %3907 = vmatprep.subr.bf16.mxu1 %v4366_v1 }
0x1868   : > { %3909 = vmatpush3.bf16.msra.mxu1 %v3908_v2 }
0x1869   : > { %3910 = vmatprep.subr.bf16.mxu1 %v4366_v1 }
0x186c   : > { %3912 = vmatpush3.bf16.msra.mxu1 %v3911_v8 }
0x186d   : > { %3913 = vmatprep.subr.bf16.mxu1 %v4366_v1 }
0x1870   : > { %3915 = vmatpush3.bf16.msra.mxu1 %v3914_v12 }
0x1871   : > { %3916 = vmatprep.subr.bf16.mxu1 %v4366_v1 }
0x1874   : > { %3918 = vmatpush3.bf16.msra.mxu1 %v3917_v24 }
0x1875   : > { %3919 = vmatprep.subr.bf16.mxu1 %v4366_v1 }
0x1885   : > { %v2198_v39 = vpop.xlane.xlu0 %2197 }
0x1889   : > { %v2204_v53 = vpop.xlane.xlu0 %2203 }
0x188d   : > { %v2202_v52 = vpop.xlane.xlu0 %2201 }
0x1891   : > { %v2208_v17 = vpop.xlane.xlu0 %2207 }
0x1932   : > { %v3441_v51 = vpop.f32.mrb[22].mxu1 }
0x1933   : > { %v2178_v34 = vadd.f32 %v3441_v51, %v258_v49  ;;  %v2172_v26 = vpop.f32.mrb[23].mxu1 }
0x1934   : > { %v2173_v30 = vadd.f32 %v2172_v26, %v258_v49  ;;  %v2288_v49 = vld [vmem:[#allocation10 + $0x1e8] sm:$0xff] }
0x1935   : > { %4145 = vtanh.f32 %v2178_v34  ;;  %v3920_v44 = vpack.c.bf16 %v2288_v49, %v2287_v27 }
0x1936   : > { %4147 = vtanh.f32 %v2173_v30 }
0x1937   : > { %3921 = vmatpush3.bf16.msra.mxu1 %v3920_v44 }
0x1938   : > { %3922 = vmatprep.subr.bf16.mxu1 %v4366_v1 }
0x193b   : > { %3924 = vmatpush3.bf16.msra.mxu1 %v3923_v48 }
0x193f   : > { %v4146_v33 = vpop.eup %4145 }
0x1940   : > { %v4148_v31 = vpop.eup %4147  ;;  %v2196_v32 = vmul.f32 %v4146_v33, %v259_v29 }
0x1941   : > { %v2195_v35 = vmul.f32 %v4148_v31, %v259_v29  ;;  %v2200_v29 = vpop.xlane.xlu1 %2199 }
0x1942   : > { %2211 = vadd.xlane.f32.xlu0 %v2196_v32  ;;  %v2214_v21 = vmax.f32 %v2200_v29, %v2208_v17 }
0x1943   : > { %2209 = vadd.xlane.f32.xlu1 %v2195_v35 }
0x1945   : > { %v2206_v19 = vpop.xlane.xlu1 %2205 }
0x1946   : > { %v2213_v25 = vmax.f32 %v2198_v39, %v2206_v19 }
0x1948   : > { %v2217_v45 = vmax.f32 %v2213_v25, %v2214_v21 }
0x19cf   : > { %v2212_v55 = vpop.xlane.xlu0 %2211 }
0x19d0   : > { %v2216_v37 = vmax.f32 %v2204_v53, %v2212_v55  ;;  %v2210_v57 = vpop.xlane.xlu1 %2209 }
0x19d1   : > { %v2215_v41 = vmax.f32 %v2202_v52, %v2210_v57 }
0x19d3   : > { %v2218_v59 = vmax.f32 %v2215_v41, %v2216_v37 }
0x19d5   : > { %v2219_v62 = vmax.f32 %v2217_v45, %v2218_v59 }
0x19d7   : > { %v2220_v11 = vsub.f32 %v2198_v39, %v2219_v62  ;;  %v2221_v3 = vsub.f32 %v2200_v29, %v2219_v62  ;;  %v2222_v6 = vsub.f32 %v2202_v52, %v2219_v62  ;;  %v2223_v1 = vsub.f32 %v2204_v53, %v2219_v62 }
0x19d8   : > { %v2224_v13 = vsub.f32 %v2206_v19, %v2219_v62  ;;  %v2225_v18 = vsub.f32 %v2208_v17, %v2219_v62  ;;  %v2226_v34 = vsub.f32 %v2210_v57, %v2219_v62  ;;  %v2227_v30 = vsub.f32 %v2212_v55, %v2219_v62 }
0x19d9   : > { %v2228_v7 = vmul.f32 1.442695, %v2220_v11  ;;  %v2230_v9 = vmul.f32 1.442695, %v2221_v3  ;;  %v2232_v16 = vmul.f32 1.442695, %v2222_v6 }
0x19da   : > { %v2234_v51 = vmul.f32 1.442695, %v2223_v1  ;;  %v2236_v26 = vmul.f32 1.442695, %v2224_v13  ;;  %v2238_v33 = vmul.f32 1.442695, %v2225_v18 }
0x19db   : > { %4149 = vpow2.f32 %v2228_v7  ;;  %v2240_v31 = vmul.f32 1.442695, %v2226_v34  ;;  %v2242_v32 = vmul.f32 1.442695, %v2227_v30 }
0x19dc   : > { %4151 = vpow2.f32 %v2230_v9 }
0x19dd   : > { %4153 = vpow2.f32 %v2232_v16 }
0x19de   : > { %4155 = vpow2.f32 %v2234_v51 }
0x19df   : > { %4157 = vpow2.f32 %v2236_v26 }
0x19e0   : > { %4159 = vpow2.f32 %v2238_v33 }
0x19e1   : > { %4161 = vpow2.f32 %v2240_v31 }
0x19e2   : > { %4163 = vpow2.f32 %v2242_v32 }
0x19e5   : > { %v4150_v35 = vpop.eup %4149 }
0x19e6   : > { %v4152_v38 = vpop.eup %4151 }
0x19e7   : > { %v2244_v58 = vadd.f32 %v4152_v38, %v4150_v35  ;;  %v4154_v42 = vpop.eup %4153 }
0x19e8   : > { %v4156_v0 = vpop.eup %4155 }
0x19e9   : > { %v2245_v60 = vadd.f32 %v4154_v42, %v2244_v58  ;;  %v4158_v28 = vpop.eup %4157 }
0x19ea   : > { %v4160_v2 = vpop.eup %4159 }
0x19eb   : > { %v2246_v56 = vadd.f32 %v4156_v0, %v2245_v60  ;;  %v4162_v23 = vpop.eup %4161 }
0x19ec   : > { %v4164_v8 = vpop.eup %4163 }
0x19ed   : > { %v2247_v61 = vadd.f32 %v4158_v28, %v2246_v56 }
0x19ef   : > { %v2248_v5 = vadd.f32 %v4160_v2, %v2247_v61 }
0x19f1   : > { %v2249_v54 = vadd.f32 %v4162_v23, %v2248_v5 }
0x19f3   : > { %v2250_v4 = vadd.f32 %v4164_v8, %v2249_v54 }
0x19f5   : > { %4165 = vrcp.f32 %v2250_v4 }
0x19ff   : > { %v4166_v12 = vpop.eup %4165 }
0x1a00   : > { %v2252_v15 = vmul.f32 %v4166_v12, %v4150_v35  ;;  %v2253_v20 = vmul.f32 %v4166_v12, %v4152_v38  ;;  %v2254_v24 = vmul.f32 %v4166_v12, %v4154_v42  ;;  %v2255_v27 = vmul.f32 %v4166_v12, %v4156_v0 }
0x1a01   : > { %v2256_v50 = vmul.f32 %v4166_v12, %v4158_v28  ;;  %v2257_v39 = vmul.f32 %v4166_v12, %v4160_v2  ;;  %v2258_v29 = vmul.f32 %v4166_v12, %v4162_v23  ;;  %v2259_v21 = vmul.f32 %v4166_v12, %v4164_v8 }
0x1a02   : > { %v2260_v49 = vmul.f32 %v2252_v15, %v5135_v63  ;;  %v2261_v44 = vmul.f32 %v2253_v20, %v5140_v14  ;;  %v2262_v36 = vmul.f32 %v2254_v24, %v5145_v43  ;;  %v2263_v53 = vmul.f32 %v2255_v27, %v5151_v46  ;;  %v260_v46 = vld [vmem:[#allocation11 + $0x3] ss:$0 sm:$0xff] }
0x1a03   : > { %v2264_v17 = vmul.f32 %v2256_v50, %v5155_v47  ;;  %v2265_v25 = vmul.f32 %v2257_v39, %v5161_v10  ;;  %v2266_v14 = vmul.f32 %v2258_v29, %v5164_v40  ;;  %v2267_v43 = vmul.f32 %v2259_v21, %v5176_v22 }
0x1a04   : > { %v2268_v48 = vadd.f32 %v2261_v44, %v2260_v49 }
0x1a06   : > { %v2269_v52 = vadd.f32 %v2268_v48, %v2262_v36 }
0x1a08   : > { %v2270_v19 = vadd.f32 %v2269_v52, %v2263_v53 }
0x1a0a   : > { %v2271_v63 = vadd.f32 %v2270_v19, %v2264_v17 }
0x1a0c   : > { %v2272_v55 = vadd.f32 %v2271_v63, %v2265_v25 }
0x1a0e   : > { %v2273_v37 = vadd.f32 %v2272_v55, %v2266_v14 }
0x1a10   : > { %v2274_v57 = vadd.f32 %v2273_v37, %v2267_v43 }
0x1a12   : > { %3475 = vmatmul.mubr.f32.vlgmr.msra.gmra.mrb[24].mxu1 %v2274_v57 }
0x1ae5   : > { %v2357_v47 = vpop.f32.mrb[24].mxu1 }
0x1ae6   : > { %v2358_v41 = vadd.f32 %v2357_v47, %v260_v46  ;;  %v3476_v45 = vpop.f32.mrb[25].mxu1 }
0x1ae8   : > { %2361 = vst [vmem:[%s256_s13] sm:$0xff] %v2358_v41 }
0x1ae9   : > { %4294 = shalt.err (!%p4291_p12)
}
0x1aea   : > { %s4295_s12 = scalar_lea.hbm %s5201_s1, 128  ;;  %s4299_s5 = scalar_lea.hbm %s5249_s4, 256 }
0x1aeb   : > { %p4296_p3 = scmp.ne.s32.totalorder %s5201_s1, %s4295_s12  ;;  %p4300_p13 = scmp.lt.u32.totalorder %s5201_s1, %s5249_s4 }
0x1aec   : > { %p4301_p7 = scmp.lt.u32.totalorder %s4299_s5, %s4295_s12  ;;  %p4303_p10 = scmp.lt.u32.totalorder %s4295_s12, %s5201_s1 }
0x1aed   : > { %p4297_p6 = pnand %p4296_p3, %p5280_p1 }
0x1aee   : > { %p4302_p9 = por %p4301_p7, %p4300_p13 }
0x1aef   : > { %p4298_p2 = pneg %p4297_p6 }
0x1af0   : > { %p4304_p4 = por %p4303_p10, %p4302_p9 }
0x1af2   : > { %p4305_p0 = pnand %p4304_p4, %p4298_p2 }
0x1af4   : > { %4308 = shalt.err (!%p4305_p0)
}
0x1af5   : > { %3963 = dma.vmem_to_hbm [thread:$0]  (%p5280_p1), %s5203_s6, 128, %s5201_s1, %s2363_s30  }
0x1af6 PF: > { %s2388_s26 = sand.u32 1, %s4343_s15   ;;  %p5281_p8 = scmp.ne.s32.totalorder %s5264_s28, 0 }
0x1af7   : > { %p5282_p5 = scmp.ge.s32.totalorder %s4355_s18, 2  ;;  %s2389_s29 = scalar_lea.sflag [#allocation7], %s2388_s26 }
0x1af9   : > { %p3980_p11 = pnand %p5282_p5, %p5281_p8 }
0x1afb   : > { %4338 = dma.done.wait (!%p3980_p11), %s2389_s29, 128  }
0x1afc   : > { %4340 = vsyncadd (!%p3980_p11), %s2389_s29, 4294967168  ;;  %s5283_s18 = sld [smem:[#allocation18_spill]]  ;;  %s5284_s11 = sld [smem:[#allocation19_spill]] }
0x1afd   : > { %s5285_s15 = smov %s4347_s16  ;;  %s5286_s16 = smov %s4351_s17 }
0x1b02   : > { %p19_p12 = scmp.ge.s32.totalorder %s5283_s18, 4   ;;  %s5287_s17 = smov %s5284_s11 }
0x1b04   :  { %21 = sbr.rel (!%p19_p12) target bundleno = 9 (0x9), region = 114 }
0x1b0b   :  { %2394 = vsyncpa [#allocation6], 1 }
0x1b0c   :  { %2396 = vsyncpa [#allocation6 + $0x1], 1 }
0x1b0d   :  { %2397 = vsyncpa [#allocation9], 1 }
0x1b0e   :  { %2398 = vsyncpa [#allocation12], 1 }
0x1b0f   :  { %2399 = vsyncpa [#allocation7], 1 }
0x1b10   :  { %2401 = vsyncpa [#allocation7 + $0x1], 1 }

</bundles_post_ra>
